<compile_context>
chip_gen: v6e
topology: v6e:2x2x1
jax: 0.10.0
libtpu: 0.0.40
codegen_flags: <defaults>
</compile_context>

<pallas_src>
import functools

import numpy as np
import jax
import jax.numpy as jnp
from jax import lax
from jax.experimental import pallas as pl
from jax.experimental.pallas import tpu as pltpu


def _round_up(v, m):
    return (v + m - 1) // m * m


# ----------------------------------------------------------------------------
# Fused Pallas kernel
# ----------------------------------------------------------------------------

def _fused_kernel(*refs, dueling, log, batch, fc_taps):
    f32, bf16 = jnp.float32, jnp.bfloat16
    it = iter(refs)
    xc_ref = next(it); w1_ref = next(it); b1_ref = next(it)
    s2_ref = next(it); w2_ref = next(it); b2_ref = next(it)
    s3_ref = next(it); w3_ref = next(it); b3_ref = next(it)
    s4_ref = next(it) if fc_taps > 1 else None
    w4_ref = next(it); b4_ref = next(it)
    wo_ref = next(it); bo_ref = next(it)
    if dueling:
        wv_ref = next(it); bv_ref = next(it)
        mmean_ref = next(it); tile_ref = next(it)
    seg_ref = next(it)
    o_ref = next(it)

    def tap_layer(act, s_ref, w_ref, b_ref):
        # conv-as-matmul: ONE gather matmul for all taps (rows stacked along M),
        # then one small weight matmul per tap, f32 accumulation, bias + ReLU.
        taps, _, c_out = w_ref.shape
        act_bf = act.astype(bf16)                        # hoisted: one cast per layer
        if s_ref is None:                                # identity gather (1x1 spatial fc)
            stacked, m_pad = act_bf, act_bf.shape[0]
        else:
            m_pad = s_ref.shape[0] // taps
            stacked = jnp.dot(s_ref[...], act_bf,        # single fused gather matmul
                              preferred_element_type=f32).astype(bf16)
        acc = jnp.dot(stacked[:m_pad], w_ref[0], preferred_element_type=f32)
        for t in range(1, taps):
            acc = acc + jnp.dot(stacked[t * m_pad:(t + 1) * m_pad], w_ref[t],
                                preferred_element_type=f32)
        return jnp.maximum(acc + b_ref[...], 0.0)

    # conv1: im2col already done (layout-only) in the wrapper -> one K-fused matmul.
    act = jnp.maximum(
        jnp.dot(xc_ref[...], w1_ref[...], preferred_element_type=f32) + b1_ref[...], 0.0)
    act = tap_layer(act, s2_ref, w2_ref, b2_ref)         # conv2 (k4, s2) + ReLU
    act = tap_layer(act, s3_ref, w3_ref, b3_ref)         # conv3 (k3, s1) + ReLU
    hidden = tap_layer(act, s4_ref, w4_ref, b4_ref)      # fc1 (+ fc_v1 along N) + ReLU

    hid = wo_ref.shape[0]
    logits = jnp.dot(hidden[:, :hid].astype(bf16), wo_ref[...],
                     preferred_element_type=f32) + bo_ref[...]           # (m, A*atoms)

    if dueling:
        v = jnp.dot(hidden[:, hid:].astype(bf16), wv_ref[...],
                    preferred_element_type=f32) + bv_ref[...]            # (m, atoms)
        mean = jnp.dot(logits, mmean_ref[...], preferred_element_type=f32)
        v_b = jnp.dot(v, tile_ref[...], preferred_element_type=f32)
        logits = logits + (v_b - mean)

    # per-action softmax over atoms, with a precomputed same-action mask.
    seg = seg_ref[...]                                                    # (aa, aa) f32
    mx = jnp.max(jnp.where(seg[None, :, :] > 0.5, logits[:, None, :], -1e30), axis=-1)
    e = jnp.exp(logits - mx)
    ssum = jnp.dot(e, seg, preferred_element_type=f32)                    # per-group sums, broadcast
    if log:
        out = (logits - mx) - jnp.log(ssum)
    else:
        out = e / ssum                                                    # exact normalization
    o_ref[...] = out[:batch, :]


# ----------------------------------------------------------------------------
# Host-side operand preparation (one-time weight re-layout + small constants)
# ----------------------------------------------------------------------------

def _gather_np(batch, h_in, w_in, kh, kw, stride, m_pad, n_cols):
    """0/1 matrix gathering, per kernel tap (taps stacked along rows), the
    im2col rows of an activation stored as (rows in (b,h,w) order [+pad], C)."""
    ho = (h_in - kh) // stride + 1
    wo = (w_in - kw) // stride + 1
    s = np.zeros((kh * kw * m_pad, n_cols), np.float32)
    for t in range(kh * kw):
        ki, kj = divmod(t, kw)
        for b in range(batch):
            for oh in range(ho):
                for ow in range(wo):
                    m = (b * ho + oh) * wo + ow
                    r = (b * h_in + stride * oh + ki) * w_in + (stride * ow + kj)
                    s[t * m_pad + m, r] = 1.0
    return s


def _fc_taps_w(w, c, h, wd):
    """fc weight (out, c*h*w) with torch (C,H,W)-flatten columns -> (h*w, c, out)."""
    out = w.shape[0]
    return w.reshape(out, c, h, wd).transpose(2, 3, 1, 0).reshape(h * wd, c, out)


def _prepare(x, params, num_actions, num_atoms, dueling):
    f32, bf16 = jnp.float32, jnp.bfloat16
    B, C, H, W = x.shape
    aa = num_actions * num_atoms

    h1, w1 = (H - 8) // 4 + 1, (W - 8) // 4 + 1          # conv1 (k8, s4)
    h2, w2 = (h1 - 4) // 2 + 1, (w1 - 4) // 2 + 1        # conv2 (k4, s2)
    h3, w3 = h2 - 2, w2 - 2                              # conv3 (k3, s1)
    m1 = _round_up(B * h1 * w1, 8)
    m2 = _round_up(B * h2 * w2, 8)
    m3 = _round_up(B * h3 * w3, 8)
    m4 = _round_up(B, 8)

    # conv1 im2col: pure layout plumbing in the wrapper, one lane-dense bf16 slab.
    xn = jnp.transpose(x, (0, 2, 3, 1))                  # (B, H, W, C)
    cols = []
    for ki in range(8):
        for kj in range(8):
            cols.append(lax.slice(
                xn, (0, ki, kj, 0),
                (B, ki + 4 * (h1 - 1) + 1, kj + 4 * (w1 - 1) + 1, C),
                (1, 4, 4, 1)))                           # (B, h1, w1, C)
    x_cols = jnp.stack(cols, axis=3).reshape(B * h1 * w1, 64 * C)
    x_cols = jnp.pad(x_cols, ((0, m1 - B * h1 * w1), (0, 0))).astype(bf16)

    # weights: conv taps -> (taps, c_in, c_out); conv1 fully K-fused to 2-D.
    w1m = jnp.transpose(params["conv1_w"], (2, 3, 1, 0)).reshape(64 * C, 32).astype(bf16)
    w2t = jnp.transpose(params["conv2_w"], (2, 3, 1, 0)).reshape(16, 32, 64).astype(bf16)
    w3t = jnp.transpose(params["conv3_w"], (2, 3, 1, 0)).reshape(9, 64, 64).astype(bf16)
    b1 = params["conv1_b"][None, :].astype(f32)
    b2 = params["conv2_b"][None, :].astype(f32)
    b3 = params["conv3_b"][None, :].astype(f32)

    # constant 0/1 gather (im2col) matrices, conv2 / conv3 only (conv1/fc1 need none).
    s2 = jnp.asarray(_gather_np(B, h1, w1, 4, 4, 2, m2, m1), bf16)
    s3 = jnp.asarray(_gather_np(B, h2, w2, 3, 3, 1, m3, m2), bf16)

    c3 = params["conv3_w"].shape[0]
    hid = params["fc1_w"].shape[0]
    fc_taps = h3 * w3
    w4t = _fc_taps_w(params["fc1_w"], c3, h3, w3)
    b4 = params["fc1_b"]
    if dueling:
        w4t = jnp.concatenate([w4t, _fc_taps_w(params["fc_v1_w"], c3, h3, w3)], axis=-1)
        b4 = jnp.concatenate([b4, params["fc_v1_b"]])
    w4t = w4t.astype(bf16)
    b4 = b4[None, :].astype(f32)

    wo = params["fc2_w"].T.astype(bf16)                  # (hid, aa)
    bo = params["fc2_b"][None, :].astype(f32)

    operands = [x_cols, w1m, b1, s2, w2t, b2, s3, w3t, b3]
    if fc_taps > 1:                                      # general case; the 1x1 demo skips it
        operands.append(jnp.asarray(_gather_np(B, h3, w3, h3, w3, 1, m4, m3), bf16))
    operands += [w4t, b4, wo, bo]

    idx = np.arange(aa)
    if dueling:
        wv = params["fc_v2_w"].T.astype(bf16)            # (hid, atoms)
        bv = params["fc_v2_b"][None, :].astype(f32)
        mmean = ((idx[:, None] % num_atoms) == (idx[None, :] % num_atoms)).astype(np.float32)
        mmean = mmean / np.float32(num_actions)          # mean over actions, broadcast per atom
        tile = (np.arange(num_atoms)[:, None] == (idx[None, :] % num_atoms)).astype(np.float32)
        operands += [wv, bv, jnp.asarray(mmean, f32), jnp.asarray(tile, f32)]

    seg = ((idx[:, None] // num_atoms) == (idx[None, :] // num_atoms)).astype(np.float32)
    operands.append(jnp.asarray(seg, f32))
    return operands, fc_taps


@functools.partial(jax.jit, static_argnames=("num_actions", "num_atoms", "dueling", "log"))
def cnn_dist_q_forward(x, params, num_actions, num_atoms, dueling=False, log=False):
    """CNNDistQ.forward (noisy=False) as a single fused Pallas TPU kernel."""
    B = x.shape[0]
    aa = num_actions * num_atoms
    operands, fc_taps = _prepare(x, params, num_actions, num_atoms, dueling)
    vmem = pltpu.MemorySpace.VMEM
    out2d = pl.pallas_call(
        functools.partial(_fused_kernel, dueling=dueling, log=log, batch=B, fc_taps=fc_taps),
        out_shape=jax.ShapeDtypeStruct((B, aa), jnp.float32),
        in_specs=[pl.BlockSpec(memory_space=vmem) for _ in operands],
        out_specs=pl.BlockSpec(memory_space=vmem),
    )(*operands)
    return out2d.reshape(B, num_actions, num_atoms)


# ----------------------------------------------------------------------------
# Pure-JAX reference for validation
# ----------------------------------------------------------------------------

def reference_forward(x, params, num_actions, num_atoms, dueling=False, log=False):
    hp = jax.lax.Precision.HIGHEST
    h = x
    for name, stride in (("conv1", 4), ("conv2", 2), ("conv3", 1)):
        h = lax.conv_general_dilated(
            h, params[name + "_w"], (stride, stride), "VALID",
            dimension_numbers=("NCHW", "OIHW", "NCHW"), precision=hp)
        h = jax.nn.relu(h + params[name + "_b"][None, :, None, None])
    feat = h.reshape(x.shape[0], -1)
    h1 = jax.nn.relu(jnp.dot(feat, params["fc1_w"].T, precision=hp) + params["fc1_b"])
    out = (jnp.dot(h1, params["fc2_w"].T, precision=hp) + params["fc2_b"]).reshape(
        -1, num_actions, num_atoms)
    if dueling:
        v1 = jax.nn.relu(jnp.dot(feat, params["fc_v1_w"].T, precision=hp) + params["fc_v1_b"])
        v = (jnp.dot(v1, params["fc_v2_w"].T, precision=hp) + params["fc_v2_b"]).reshape(
            -1, 1, num_atoms)
        out = out + (v - out.mean(axis=1, keepdims=True))
    return jax.nn.log_softmax(out, axis=2) if log else jax.nn.softmax(out, axis=2)


# ----------------------------------------------------------------------------
# Main
# ----------------------------------------------------------------------------

def make_params(key, input_shape, num_actions, num_atoms, feature_size):
    ks = jax.random.split(key, 16)
    c_in = input_shape[0]
    w_s, b_s = 0.05, 0.01
    p = {
        "conv1_w": jax.random.normal(ks[0], (32, c_in, 8, 8), jnp.float32) * w_s,
        "conv1_b": jax.random.normal(ks[1], (32,), jnp.float32) * b_s,
        "conv2_w": jax.random.normal(ks[2], (64, 32, 4, 4), jnp.float32) * w_s,
        "conv2_b": jax.random.normal(ks[3], (64,), jnp.float32) * b_s,
        "conv3_w": jax.random.normal(ks[4], (64, 64, 3, 3), jnp.float32) * w_s,
        "conv3_b": jax.random.normal(ks[5], (64,), jnp.float32) * b_s,
        "fc1_w": jax.random.normal(ks[6], (512, feature_size), jnp.float32) * w_s,
        "fc1_b": jax.random.normal(ks[7], (512,), jnp.float32) * b_s,
        "fc2_w": jax.random.normal(ks[8], (num_actions * num_atoms, 512), jnp.float32) * w_s,
        "fc2_b": jax.random.normal(ks[9], (num_actions * num_atoms,), jnp.float32) * b_s,
        # dueling heads
        "fc_v1_w": jax.random.normal(ks[10], (512, feature_size), jnp.float32) * w_s,
        "fc_v1_b": jax.random.normal(ks[11], (512,), jnp.float32) * b_s,
        "fc_v2_w": jax.random.normal(ks[12], (num_atoms, 512), jnp.float32) * w_s,
        "fc_v2_b": jax.random.normal(ks[13], (num_atoms,), jnp.float32) * b_s,
    }
    return p, ks[15]


if __name__ == "__main__":
    # conv stack: 36 -> (k8,s4) 8 -> (k4,s2) 3 -> (k3,s1) 1  => feature_size = 64*1*1
    input_shape = (4, 36, 36)
    num_actions, num_atoms = 4, 8
    feature_size = 64
    batch = 2

    params, xkey = make_params(jax.random.PRNGKey(0), input_shape,
                               num_actions, num_atoms, feature_size)
    x = jax.random.normal(xkey, (batch,) + input_shape, jnp.float32)

    out = jax.block_until_ready(cnn_dist_q_forward(
        x, params, num_actions=num_actions, num_atoms=num_atoms, dueling=False, log=False))
    out_duel = jax.block_until_ready(cnn_dist_q_forward(
        x, params, num_actions=num_actions, num_atoms=num_atoms, dueling=True, log=False))
    out_duel_log = jax.block_until_ready(cnn_dist_q_forward(
        x, params, num_actions=num_actions, num_atoms=num_atoms, dueling=True, log=True))

    ref = reference_forward(x, params, num_actions, num_atoms, dueling=False, log=False)
    ref_duel = reference_forward(x, params, num_actions, num_atoms, dueling=True, log=False)
    ref_duel_log = reference_forward(x, params, num_actions, num_atoms, dueling=True, log=True)

    assert out.shape == (batch, num_actions, num_atoms)
    # exact normalization (no approx reciprocal any more)
    np.testing.assert_allclose(np.asarray(out).sum(-1), 1.0, atol=1e-4)
    np.testing.assert_allclose(np.asarray(out), np.asarray(ref), rtol=2e-2, atol=2e-3)
    np.testing.assert_allclose(np.asarray(out_duel), np.asarray(ref_duel), rtol=2e-2, atol=2e-3)
    np.testing.assert_allclose(np.asarray(out_duel_log), np.asarray(ref_duel_log),
                               rtol=2e-2, atol=2e-2)

    print("KERNEL_OK")
</pallas_src>

<mosaic_0001>
module attributes {stable_mosaic.version = 11 : i64} {
  func.func @_fused_kernel(%arg0: memref<128x256xbf16, #tpu.memory_space<vmem>>, %arg1: memref<256x32xbf16, #tpu.memory_space<vmem>>, %arg2: memref<1x32xf32, #tpu.memory_space<vmem>>, %arg3: memref<384x128xbf16, #tpu.memory_space<vmem>>, %arg4: memref<16x32x64xbf16, #tpu.memory_space<vmem>>, %arg5: memref<1x64xf32, #tpu.memory_space<vmem>>, %arg6: memref<72x24xbf16, #tpu.memory_space<vmem>>, %arg7: memref<9x64x64xbf16, #tpu.memory_space<vmem>>, %arg8: memref<1x64xf32, #tpu.memory_space<vmem>>, %arg9: memref<1x64x512xbf16, #tpu.memory_space<vmem>>, %arg10: memref<1x512xf32, #tpu.memory_space<vmem>>, %arg11: memref<512x32xbf16, #tpu.memory_space<vmem>>, %arg12: memref<1x32xf32, #tpu.memory_space<vmem>>, %arg13: memref<32x32xf32, #tpu.memory_space<vmem>>, %arg14: memref<2x32xf32, #tpu.memory_space<vmem>>) attributes {dimension_semantics = [], scalar_prefetch = 0 : i64, scratch_operands = 0 : i64, tpu.core_type = #tpu.core_type<tc>} {
    %c0 = arith.constant 0 : index
    %c0_0 = arith.constant 0 : index
    %0 = vector.load %arg0[%c0, %c0_0] : memref<128x256xbf16, #tpu.memory_space<vmem>>, vector<128x256xbf16>
    %c0_1 = arith.constant 0 : index
    %c0_2 = arith.constant 0 : index
    %1 = vector.load %arg1[%c0_1, %c0_2] : memref<256x32xbf16, #tpu.memory_space<vmem>>, vector<256x32xbf16>
    %cst = arith.constant dense<0.000000e+00> : vector<128x32xf32>
    %2 = tpu.matmul %0, %1, %cst {dimension_numbers = #tpu.dot_dimension_numbers<[1], [0], [0], [1], [0, 0, 1, 1], [], []>} : vector<128x256xbf16>, vector<256x32xbf16>, vector<128x32xf32> -> vector<128x32xf32>
    %c0_3 = arith.constant 0 : index
    %c0_4 = arith.constant 0 : index
    %3 = vector.load %arg2[%c0_3, %c0_4] : memref<1x32xf32, #tpu.memory_space<vmem>>, vector<1x32xf32>
    %4 = vector.broadcast %3 : vector<1x32xf32> to vector<128x32xf32>
    %5 = arith.addf %2, %4 : vector<128x32xf32>
    %cst_5 = arith.constant 0.000000e+00 : f32
    %6 = vector.broadcast %cst_5 : f32 to vector<128x32xf32>
    %7 = arith.maximumf %5, %6 : vector<128x32xf32>
    %8 = arith.truncf %7 : vector<128x32xf32> to vector<128x32xbf16>
    %c0_6 = arith.constant 0 : index
    %c0_7 = arith.constant 0 : index
    %9 = vector.load %arg3[%c0_6, %c0_7] : memref<384x128xbf16, #tpu.memory_space<vmem>>, vector<384x128xbf16>
    %cst_8 = arith.constant dense<0.000000e+00> : vector<384x32xf32>
    %10 = tpu.matmul %9, %8, %cst_8 {dimension_numbers = #tpu.dot_dimension_numbers<[1], [0], [0], [1], [0, 0, 1, 1], [], []>} : vector<384x128xbf16>, vector<128x32xbf16>, vector<384x32xf32> -> vector<384x32xf32>
    %11 = arith.truncf %10 : vector<384x32xf32> to vector<384x32xbf16>
    %12 = vector.extract_strided_slice %11 {offsets = [0, 0], sizes = [24, 32], strides = [1, 1]} : vector<384x32xbf16> to vector<24x32xbf16>
    %c0_9 = arith.constant 0 : index
    %c0_10 = arith.constant 0 : index
    %c0_11 = arith.constant 0 : index
    %13 = vector.load %arg4[%c0_9, %c0_10, %c0_11] : memref<16x32x64xbf16, #tpu.memory_space<vmem>>, vector<1x32x64xbf16>
    %14 = vector.shape_cast %13 : vector<1x32x64xbf16> to vector<32x64xbf16>
    %cst_12 = arith.constant dense<0.000000e+00> : vector<24x64xf32>
    %15 = tpu.matmul %12, %14, %cst_12 {dimension_numbers = #tpu.dot_dimension_numbers<[1], [0], [0], [1], [0, 0, 1, 1], [], []>} : vector<24x32xbf16>, vector<32x64xbf16>, vector<24x64xf32> -> vector<24x64xf32>
    %16 = vector.extract_strided_slice %11 {offsets = [24, 0], sizes = [24, 32], strides = [1, 1]} : vector<384x32xbf16> to vector<24x32xbf16>
    %c1 = arith.constant 1 : index
    %c0_13 = arith.constant 0 : index
    %c0_14 = arith.constant 0 : index
    %17 = vector.load %arg4[%c1, %c0_13, %c0_14] : memref<16x32x64xbf16, #tpu.memory_space<vmem>>, vector<1x32x64xbf16>
    %18 = vector.shape_cast %17 : vector<1x32x64xbf16> to vector<32x64xbf16>
    %cst_15 = arith.constant dense<0.000000e+00> : vector<24x64xf32>
    %19 = tpu.matmul %16, %18, %cst_15 {dimension_numbers = #tpu.dot_dimension_numbers<[1], [0], [0], [1], [0, 0, 1, 1], [], []>} : vector<24x32xbf16>, vector<32x64xbf16>, vector<24x64xf32> -> vector<24x64xf32>
    %20 = arith.addf %15, %19 : vector<24x64xf32>
    %21 = vector.extract_strided_slice %11 {offsets = [48, 0], sizes = [24, 32], strides = [1, 1]} : vector<384x32xbf16> to vector<24x32xbf16>
    %c2 = arith.constant 2 : index
    %c0_16 = arith.constant 0 : index
    %c0_17 = arith.constant 0 : index
    %22 = vector.load %arg4[%c2, %c0_16, %c0_17] : memref<16x32x64xbf16, #tpu.memory_space<vmem>>, vector<1x32x64xbf16>
    %23 = vector.shape_cast %22 : vector<1x32x64xbf16> to vector<32x64xbf16>
    %cst_18 = arith.constant dense<0.000000e+00> : vector<24x64xf32>
    %24 = tpu.matmul %21, %23, %cst_18 {dimension_numbers = #tpu.dot_dimension_numbers<[1], [0], [0], [1], [0, 0, 1, 1], [], []>} : vector<24x32xbf16>, vector<32x64xbf16>, vector<24x64xf32> -> vector<24x64xf32>
    %25 = arith.addf %20, %24 : vector<24x64xf32>
    %26 = vector.extract_strided_slice %11 {offsets = [72, 0], sizes = [24, 32], strides = [1, 1]} : vector<384x32xbf16> to vector<24x32xbf16>
    %c3 = arith.constant 3 : index
    %c0_19 = arith.constant 0 : index
    %c0_20 = arith.constant 0 : index
    %27 = vector.load %arg4[%c3, %c0_19, %c0_20] : memref<16x32x64xbf16, #tpu.memory_space<vmem>>, vector<1x32x64xbf16>
    %28 = vector.shape_cast %27 : vector<1x32x64xbf16> to vector<32x64xbf16>
    %cst_21 = arith.constant dense<0.000000e+00> : vector<24x64xf32>
    %29 = tpu.matmul %26, %28, %cst_21 {dimension_numbers = #tpu.dot_dimension_numbers<[1], [0], [0], [1], [0, 0, 1, 1], [], []>} : vector<24x32xbf16>, vector<32x64xbf16>, vector<24x64xf32> -> vector<24x64xf32>
    %30 = arith.addf %25, %29 : vector<24x64xf32>
    %31 = vector.extract_strided_slice %11 {offsets = [96, 0], sizes = [24, 32], strides = [1, 1]} : vector<384x32xbf16> to vector<24x32xbf16>
    %c4 = arith.constant 4 : index
    %c0_22 = arith.constant 0 : index
    %c0_23 = arith.constant 0 : index
    %32 = vector.load %arg4[%c4, %c0_22, %c0_23] : memref<16x32x64xbf16, #tpu.memory_space<vmem>>, vector<1x32x64xbf16>
    %33 = vector.shape_cast %32 : vector<1x32x64xbf16> to vector<32x64xbf16>
    %cst_24 = arith.constant dense<0.000000e+00> : vector<24x64xf32>
    %34 = tpu.matmul %31, %33, %cst_24 {dimension_numbers = #tpu.dot_dimension_numbers<[1], [0], [0], [1], [0, 0, 1, 1], [], []>} : vector<24x32xbf16>, vector<32x64xbf16>, vector<24x64xf32> -> vector<24x64xf32>
    %35 = arith.addf %30, %34 : vector<24x64xf32>
    %36 = vector.extract_strided_slice %11 {offsets = [120, 0], sizes = [24, 32], strides = [1, 1]} : vector<384x32xbf16> to vector<24x32xbf16>
    %c5 = arith.constant 5 : index
    %c0_25 = arith.constant 0 : index
    %c0_26 = arith.constant 0 : index
    %37 = vector.load %arg4[%c5, %c0_25, %c0_26] : memref<16x32x64xbf16, #tpu.memory_space<vmem>>, vector<1x32x64xbf16>
    %38 = vector.shape_cast %37 : vector<1x32x64xbf16> to vector<32x64xbf16>
    %cst_27 = arith.constant dense<0.000000e+00> : vector<24x64xf32>
    %39 = tpu.matmul %36, %38, %cst_27 {dimension_numbers = #tpu.dot_dimension_numbers<[1], [0], [0], [1], [0, 0, 1, 1], [], []>} : vector<24x32xbf16>, vector<32x64xbf16>, vector<24x64xf32> -> vector<24x64xf32>
    %40 = arith.addf %35, %39 : vector<24x64xf32>
    %41 = vector.extract_strided_slice %11 {offsets = [144, 0], sizes = [24, 32], strides = [1, 1]} : vector<384x32xbf16> to vector<24x32xbf16>
    %c6 = arith.constant 6 : index
    %c0_28 = arith.constant 0 : index
    %c0_29 = arith.constant 0 : index
    %42 = vector.load %arg4[%c6, %c0_28, %c0_29] : memref<16x32x64xbf16, #tpu.memory_space<vmem>>, vector<1x32x64xbf16>
    %43 = vector.shape_cast %42 : vector<1x32x64xbf16> to vector<32x64xbf16>
    %cst_30 = arith.constant dense<0.000000e+00> : vector<24x64xf32>
    %44 = tpu.matmul %41, %43, %cst_30 {dimension_numbers = #tpu.dot_dimension_numbers<[1], [0], [0], [1], [0, 0, 1, 1], [], []>} : vector<24x32xbf16>, vector<32x64xbf16>, vector<24x64xf32> -> vector<24x64xf32>
    %45 = arith.addf %40, %44 : vector<24x64xf32>
    %46 = vector.extract_strided_slice %11 {offsets = [168, 0], sizes = [24, 32], strides = [1, 1]} : vector<384x32xbf16> to vector<24x32xbf16>
    %c7 = arith.constant 7 : index
    %c0_31 = arith.constant 0 : index
    %c0_32 = arith.constant 0 : index
    %47 = vector.load %arg4[%c7, %c0_31, %c0_32] : memref<16x32x64xbf16, #tpu.memory_space<vmem>>, vector<1x32x64xbf16>
    %48 = vector.shape_cast %47 : vector<1x32x64xbf16> to vector<32x64xbf16>
    %cst_33 = arith.constant dense<0.000000e+00> : vector<24x64xf32>
    %49 = tpu.matmul %46, %48, %cst_33 {dimension_numbers = #tpu.dot_dimension_numbers<[1], [0], [0], [1], [0, 0, 1, 1], [], []>} : vector<24x32xbf16>, vector<32x64xbf16>, vector<24x64xf32> -> vector<24x64xf32>
    %50 = arith.addf %45, %49 : vector<24x64xf32>
    %51 = vector.extract_strided_slice %11 {offsets = [192, 0], sizes = [24, 32], strides = [1, 1]} : vector<384x32xbf16> to vector<24x32xbf16>
    %c8 = arith.constant 8 : index
    %c0_34 = arith.constant 0 : index
    %c0_35 = arith.constant 0 : index
    %52 = vector.load %arg4[%c8, %c0_34, %c0_35] : memref<16x32x64xbf16, #tpu.memory_space<vmem>>, vector<1x32x64xbf16>
    %53 = vector.shape_cast %52 : vector<1x32x64xbf16> to vector<32x64xbf16>
    %cst_36 = arith.constant dense<0.000000e+00> : vector<24x64xf32>
    %54 = tpu.matmul %51, %53, %cst_36 {dimension_numbers = #tpu.dot_dimension_numbers<[1], [0], [0], [1], [0, 0, 1, 1], [], []>} : vector<24x32xbf16>, vector<32x64xbf16>, vector<24x64xf32> -> vector<24x64xf32>
    %55 = arith.addf %50, %54 : vector<24x64xf32>
    %56 = vector.extract_strided_slice %11 {offsets = [216, 0], sizes = [24, 32], strides = [1, 1]} : vector<384x32xbf16> to vector<24x32xbf16>
    %c9 = arith.constant 9 : index
    %c0_37 = arith.constant 0 : index
    %c0_38 = arith.constant 0 : index
    %57 = vector.load %arg4[%c9, %c0_37, %c0_38] : memref<16x32x64xbf16, #tpu.memory_space<vmem>>, vector<1x32x64xbf16>
    %58 = vector.shape_cast %57 : vector<1x32x64xbf16> to vector<32x64xbf16>
    %cst_39 = arith.constant dense<0.000000e+00> : vector<24x64xf32>
    %59 = tpu.matmul %56, %58, %cst_39 {dimension_numbers = #tpu.dot_dimension_numbers<[1], [0], [0], [1], [0, 0, 1, 1], [], []>} : vector<24x32xbf16>, vector<32x64xbf16>, vector<24x64xf32> -> vector<24x64xf32>
    %60 = arith.addf %55, %59 : vector<24x64xf32>
    %61 = vector.extract_strided_slice %11 {offsets = [240, 0], sizes = [24, 32], strides = [1, 1]} : vector<384x32xbf16> to vector<24x32xbf16>
    %c10 = arith.constant 10 : index
    %c0_40 = arith.constant 0 : index
    %c0_41 = arith.constant 0 : index
    %62 = vector.load %arg4[%c10, %c0_40, %c0_41] : memref<16x32x64xbf16, #tpu.memory_space<vmem>>, vector<1x32x64xbf16>
    %63 = vector.shape_cast %62 : vector<1x32x64xbf16> to vector<32x64xbf16>
    %cst_42 = arith.constant dense<0.000000e+00> : vector<24x64xf32>
    %64 = tpu.matmul %61, %63, %cst_42 {dimension_numbers = #tpu.dot_dimension_numbers<[1], [0], [0], [1], [0, 0, 1, 1], [], []>} : vector<24x32xbf16>, vector<32x64xbf16>, vector<24x64xf32> -> vector<24x64xf32>
    %65 = arith.addf %60, %64 : vector<24x64xf32>
    %66 = vector.extract_strided_slice %11 {offsets = [264, 0], sizes = [24, 32], strides = [1, 1]} : vector<384x32xbf16> to vector<24x32xbf16>
    %c11 = arith.constant 11 : index
    %c0_43 = arith.constant 0 : index
    %c0_44 = arith.constant 0 : index
    %67 = vector.load %arg4[%c11, %c0_43, %c0_44] : memref<16x32x64xbf16, #tpu.memory_space<vmem>>, vector<1x32x64xbf16>
    %68 = vector.shape_cast %67 : vector<1x32x64xbf16> to vector<32x64xbf16>
    %cst_45 = arith.constant dense<0.000000e+00> : vector<24x64xf32>
    %69 = tpu.matmul %66, %68, %cst_45 {dimension_numbers = #tpu.dot_dimension_numbers<[1], [0], [0], [1], [0, 0, 1, 1], [], []>} : vector<24x32xbf16>, vector<32x64xbf16>, vector<24x64xf32> -> vector<24x64xf32>
    %70 = arith.addf %65, %69 : vector<24x64xf32>
    %71 = vector.extract_strided_slice %11 {offsets = [288, 0], sizes = [24, 32], strides = [1, 1]} : vector<384x32xbf16> to vector<24x32xbf16>
    %c12 = arith.constant 12 : index
    %c0_46 = arith.constant 0 : index
    %c0_47 = arith.constant 0 : index
    %72 = vector.load %arg4[%c12, %c0_46, %c0_47] : memref<16x32x64xbf16, #tpu.memory_space<vmem>>, vector<1x32x64xbf16>
    %73 = vector.shape_cast %72 : vector<1x32x64xbf16> to vector<32x64xbf16>
    %cst_48 = arith.constant dense<0.000000e+00> : vector<24x64xf32>
    %74 = tpu.matmul %71, %73, %cst_48 {dimension_numbers = #tpu.dot_dimension_numbers<[1], [0], [0], [1], [0, 0, 1, 1], [], []>} : vector<24x32xbf16>, vector<32x64xbf16>, vector<24x64xf32> -> vector<24x64xf32>
    %75 = arith.addf %70, %74 : vector<24x64xf32>
    %76 = vector.extract_strided_slice %11 {offsets = [312, 0], sizes = [24, 32], strides = [1, 1]} : vector<384x32xbf16> to vector<24x32xbf16>
    %c13 = arith.constant 13 : index
    %c0_49 = arith.constant 0 : index
    %c0_50 = arith.constant 0 : index
    %77 = vector.load %arg4[%c13, %c0_49, %c0_50] : memref<16x32x64xbf16, #tpu.memory_space<vmem>>, vector<1x32x64xbf16>
    %78 = vector.shape_cast %77 : vector<1x32x64xbf16> to vector<32x64xbf16>
    %cst_51 = arith.constant dense<0.000000e+00> : vector<24x64xf32>
    %79 = tpu.matmul %76, %78, %cst_51 {dimension_numbers = #tpu.dot_dimension_numbers<[1], [0], [0], [1], [0, 0, 1, 1], [], []>} : vector<24x32xbf16>, vector<32x64xbf16>, vector<24x64xf32> -> vector<24x64xf32>
    %80 = arith.addf %75, %79 : vector<24x64xf32>
    %81 = vector.extract_strided_slice %11 {offsets = [336, 0], sizes = [24, 32], strides = [1, 1]} : vector<384x32xbf16> to vector<24x32xbf16>
    %c14 = arith.constant 14 : index
    %c0_52 = arith.constant 0 : index
    %c0_53 = arith.constant 0 : index
    %82 = vector.load %arg4[%c14, %c0_52, %c0_53] : memref<16x32x64xbf16, #tpu.memory_space<vmem>>, vector<1x32x64xbf16>
    %83 = vector.shape_cast %82 : vector<1x32x64xbf16> to vector<32x64xbf16>
    %cst_54 = arith.constant dense<0.000000e+00> : vector<24x64xf32>
    %84 = tpu.matmul %81, %83, %cst_54 {dimension_numbers = #tpu.dot_dimension_numbers<[1], [0], [0], [1], [0, 0, 1, 1], [], []>} : vector<24x32xbf16>, vector<32x64xbf16>, vector<24x64xf32> -> vector<24x64xf32>
    %85 = arith.addf %80, %84 : vector<24x64xf32>
    %86 = vector.extract_strided_slice %11 {offsets = [360, 0], sizes = [24, 32], strides = [1, 1]} : vector<384x32xbf16> to vector<24x32xbf16>
    %c15 = arith.constant 15 : index
    %c0_55 = arith.constant 0 : index
    %c0_56 = arith.constant 0 : index
    %87 = vector.load %arg4[%c15, %c0_55, %c0_56] : memref<16x32x64xbf16, #tpu.memory_space<vmem>>, vector<1x32x64xbf16>
    %88 = vector.shape_cast %87 : vector<1x32x64xbf16> to vector<32x64xbf16>
    %cst_57 = arith.constant dense<0.000000e+00> : vector<24x64xf32>
    %89 = tpu.matmul %86, %88, %cst_57 {dimension_numbers = #tpu.dot_dimension_numbers<[1], [0], [0], [1], [0, 0, 1, 1], [], []>} : vector<24x32xbf16>, vector<32x64xbf16>, vector<24x64xf32> -> vector<24x64xf32>
    %90 = arith.addf %85, %89 : vector<24x64xf32>
    %c0_58 = arith.constant 0 : index
    %c0_59 = arith.constant 0 : index
    %91 = vector.load %arg5[%c0_58, %c0_59] : memref<1x64xf32, #tpu.memory_space<vmem>>, vector<1x64xf32>
    %92 = vector.broadcast %91 : vector<1x64xf32> to vector<24x64xf32>
    %93 = arith.addf %90, %92 : vector<24x64xf32>
    %cst_60 = arith.constant 0.000000e+00 : f32
    %94 = vector.broadcast %cst_60 : f32 to vector<24x64xf32>
    %95 = arith.maximumf %93, %94 : vector<24x64xf32>
    %96 = arith.truncf %95 : vector<24x64xf32> to vector<24x64xbf16>
    %c0_61 = arith.constant 0 : index
    %c0_62 = arith.constant 0 : index
    %97 = vector.load %arg6[%c0_61, %c0_62] : memref<72x24xbf16, #tpu.memory_space<vmem>>, vector<72x24xbf16>
    %cst_63 = arith.constant dense<0.000000e+00> : vector<72x64xf32>
    %98 = tpu.matmul %97, %96, %cst_63 {dimension_numbers = #tpu.dot_dimension_numbers<[1], [0], [0], [1], [0, 0, 1, 1], [], []>} : vector<72x24xbf16>, vector<24x64xbf16>, vector<72x64xf32> -> vector<72x64xf32>
    %99 = arith.truncf %98 : vector<72x64xf32> to vector<72x64xbf16>
    %100 = vector.extract_strided_slice %99 {offsets = [0, 0], sizes = [8, 64], strides = [1, 1]} : vector<72x64xbf16> to vector<8x64xbf16>
    %c0_64 = arith.constant 0 : index
    %c0_65 = arith.constant 0 : index
    %c0_66 = arith.constant 0 : index
    %101 = vector.load %arg7[%c0_64, %c0_65, %c0_66] : memref<9x64x64xbf16, #tpu.memory_space<vmem>>, vector<1x64x64xbf16>
    %102 = vector.shape_cast %101 : vector<1x64x64xbf16> to vector<64x64xbf16>
    %cst_67 = arith.constant dense<0.000000e+00> : vector<8x64xf32>
    %103 = tpu.matmul %100, %102, %cst_67 {dimension_numbers = #tpu.dot_dimension_numbers<[1], [0], [0], [1], [0, 0, 1, 1], [], []>} : vector<8x64xbf16>, vector<64x64xbf16>, vector<8x64xf32> -> vector<8x64xf32>
    %104 = vector.extract_strided_slice %99 {offsets = [8, 0], sizes = [8, 64], strides = [1, 1]} : vector<72x64xbf16> to vector<8x64xbf16>
    %c1_68 = arith.constant 1 : index
    %c0_69 = arith.constant 0 : index
    %c0_70 = arith.constant 0 : index
    %105 = vector.load %arg7[%c1_68, %c0_69, %c0_70] : memref<9x64x64xbf16, #tpu.memory_space<vmem>>, vector<1x64x64xbf16>
    %106 = vector.shape_cast %105 : vector<1x64x64xbf16> to vector<64x64xbf16>
    %cst_71 = arith.constant dense<0.000000e+00> : vector<8x64xf32>
    %107 = tpu.matmul %104, %106, %cst_71 {dimension_numbers = #tpu.dot_dimension_numbers<[1], [0], [0], [1], [0, 0, 1, 1], [], []>} : vector<8x64xbf16>, vector<64x64xbf16>, vector<8x64xf32> -> vector<8x64xf32>
    %108 = arith.addf %103, %107 : vector<8x64xf32>
    %109 = vector.extract_strided_slice %99 {offsets = [16, 0], sizes = [8, 64], strides = [1, 1]} : vector<72x64xbf16> to vector<8x64xbf16>
    %c2_72 = arith.constant 2 : index
    %c0_73 = arith.constant 0 : index
    %c0_74 = arith.constant 0 : index
    %110 = vector.load %arg7[%c2_72, %c0_73, %c0_74] : memref<9x64x64xbf16, #tpu.memory_space<vmem>>, vector<1x64x64xbf16>
    %111 = vector.shape_cast %110 : vector<1x64x64xbf16> to vector<64x64xbf16>
    %cst_75 = arith.constant dense<0.000000e+00> : vector<8x64xf32>
    %112 = tpu.matmul %109, %111, %cst_75 {dimension_numbers = #tpu.dot_dimension_numbers<[1], [0], [0], [1], [0, 0, 1, 1], [], []>} : vector<8x64xbf16>, vector<64x64xbf16>, vector<8x64xf32> -> vector<8x64xf32>
    %113 = arith.addf %108, %112 : vector<8x64xf32>
    %114 = vector.extract_strided_slice %99 {offsets = [24, 0], sizes = [8, 64], strides = [1, 1]} : vector<72x64xbf16> to vector<8x64xbf16>
    %c3_76 = arith.constant 3 : index
    %c0_77 = arith.constant 0 : index
    %c0_78 = arith.constant 0 : index
    %115 = vector.load %arg7[%c3_76, %c0_77, %c0_78] : memref<9x64x64xbf16, #tpu.memory_space<vmem>>, vector<1x64x64xbf16>
    %116 = vector.shape_cast %115 : vector<1x64x64xbf16> to vector<64x64xbf16>
    %cst_79 = arith.constant dense<0.000000e+00> : vector<8x64xf32>
    %117 = tpu.matmul %114, %116, %cst_79 {dimension_numbers = #tpu.dot_dimension_numbers<[1], [0], [0], [1], [0, 0, 1, 1], [], []>} : vector<8x64xbf16>, vector<64x64xbf16>, vector<8x64xf32> -> vector<8x64xf32>
    %118 = arith.addf %113, %117 : vector<8x64xf32>
    %119 = vector.extract_strided_slice %99 {offsets = [32, 0], sizes = [8, 64], strides = [1, 1]} : vector<72x64xbf16> to vector<8x64xbf16>
    %c4_80 = arith.constant 4 : index
    %c0_81 = arith.constant 0 : index
    %c0_82 = arith.constant 0 : index
    %120 = vector.load %arg7[%c4_80, %c0_81, %c0_82] : memref<9x64x64xbf16, #tpu.memory_space<vmem>>, vector<1x64x64xbf16>
    %121 = vector.shape_cast %120 : vector<1x64x64xbf16> to vector<64x64xbf16>
    %cst_83 = arith.constant dense<0.000000e+00> : vector<8x64xf32>
    %122 = tpu.matmul %119, %121, %cst_83 {dimension_numbers = #tpu.dot_dimension_numbers<[1], [0], [0], [1], [0, 0, 1, 1], [], []>} : vector<8x64xbf16>, vector<64x64xbf16>, vector<8x64xf32> -> vector<8x64xf32>
    %123 = arith.addf %118, %122 : vector<8x64xf32>
    %124 = vector.extract_strided_slice %99 {offsets = [40, 0], sizes = [8, 64], strides = [1, 1]} : vector<72x64xbf16> to vector<8x64xbf16>
    %c5_84 = arith.constant 5 : index
    %c0_85 = arith.constant 0 : index
    %c0_86 = arith.constant 0 : index
    %125 = vector.load %arg7[%c5_84, %c0_85, %c0_86] : memref<9x64x64xbf16, #tpu.memory_space<vmem>>, vector<1x64x64xbf16>
    %126 = vector.shape_cast %125 : vector<1x64x64xbf16> to vector<64x64xbf16>
    %cst_87 = arith.constant dense<0.000000e+00> : vector<8x64xf32>
    %127 = tpu.matmul %124, %126, %cst_87 {dimension_numbers = #tpu.dot_dimension_numbers<[1], [0], [0], [1], [0, 0, 1, 1], [], []>} : vector<8x64xbf16>, vector<64x64xbf16>, vector<8x64xf32> -> vector<8x64xf32>
    %128 = arith.addf %123, %127 : vector<8x64xf32>
    %129 = vector.extract_strided_slice %99 {offsets = [48, 0], sizes = [8, 64], strides = [1, 1]} : vector<72x64xbf16> to vector<8x64xbf16>
    %c6_88 = arith.constant 6 : index
    %c0_89 = arith.constant 0 : index
    %c0_90 = arith.constant 0 : index
    %130 = vector.load %arg7[%c6_88, %c0_89, %c0_90] : memref<9x64x64xbf16, #tpu.memory_space<vmem>>, vector<1x64x64xbf16>
    %131 = vector.shape_cast %130 : vector<1x64x64xbf16> to vector<64x64xbf16>
    %cst_91 = arith.constant dense<0.000000e+00> : vector<8x64xf32>
    %132 = tpu.matmul %129, %131, %cst_91 {dimension_numbers = #tpu.dot_dimension_numbers<[1], [0], [0], [1], [0, 0, 1, 1], [], []>} : vector<8x64xbf16>, vector<64x64xbf16>, vector<8x64xf32> -> vector<8x64xf32>
    %133 = arith.addf %128, %132 : vector<8x64xf32>
    %134 = vector.extract_strided_slice %99 {offsets = [56, 0], sizes = [8, 64], strides = [1, 1]} : vector<72x64xbf16> to vector<8x64xbf16>
    %c7_92 = arith.constant 7 : index
    %c0_93 = arith.constant 0 : index
    %c0_94 = arith.constant 0 : index
    %135 = vector.load %arg7[%c7_92, %c0_93, %c0_94] : memref<9x64x64xbf16, #tpu.memory_space<vmem>>, vector<1x64x64xbf16>
    %136 = vector.shape_cast %135 : vector<1x64x64xbf16> to vector<64x64xbf16>
    %cst_95 = arith.constant dense<0.000000e+00> : vector<8x64xf32>
    %137 = tpu.matmul %134, %136, %cst_95 {dimension_numbers = #tpu.dot_dimension_numbers<[1], [0], [0], [1], [0, 0, 1, 1], [], []>} : vector<8x64xbf16>, vector<64x64xbf16>, vector<8x64xf32> -> vector<8x64xf32>
    %138 = arith.addf %133, %137 : vector<8x64xf32>
    %139 = vector.extract_strided_slice %99 {offsets = [64, 0], sizes = [8, 64], strides = [1, 1]} : vector<72x64xbf16> to vector<8x64xbf16>
    %c8_96 = arith.constant 8 : index
    %c0_97 = arith.constant 0 : index
    %c0_98 = arith.constant 0 : index
    %140 = vector.load %arg7[%c8_96, %c0_97, %c0_98] : memref<9x64x64xbf16, #tpu.memory_space<vmem>>, vector<1x64x64xbf16>
    %141 = vector.shape_cast %140 : vector<1x64x64xbf16> to vector<64x64xbf16>
    %cst_99 = arith.constant dense<0.000000e+00> : vector<8x64xf32>
    %142 = tpu.matmul %139, %141, %cst_99 {dimension_numbers = #tpu.dot_dimension_numbers<[1], [0], [0], [1], [0, 0, 1, 1], [], []>} : vector<8x64xbf16>, vector<64x64xbf16>, vector<8x64xf32> -> vector<8x64xf32>
    %143 = arith.addf %138, %142 : vector<8x64xf32>
    %c0_100 = arith.constant 0 : index
    %c0_101 = arith.constant 0 : index
    %144 = vector.load %arg8[%c0_100, %c0_101] : memref<1x64xf32, #tpu.memory_space<vmem>>, vector<1x64xf32>
    %145 = vector.broadcast %144 : vector<1x64xf32> to vector<8x64xf32>
    %146 = arith.addf %143, %145 : vector<8x64xf32>
    %cst_102 = arith.constant 0.000000e+00 : f32
    %147 = vector.broadcast %cst_102 : f32 to vector<8x64xf32>
    %148 = arith.maximumf %146, %147 : vector<8x64xf32>
    %149 = arith.truncf %148 : vector<8x64xf32> to vector<8x64xbf16>
    %c0_103 = arith.constant 0 : index
    %c0_104 = arith.constant 0 : index
    %c0_105 = arith.constant 0 : index
    %150 = vector.load %arg9[%c0_103, %c0_104, %c0_105] : memref<1x64x512xbf16, #tpu.memory_space<vmem>>, vector<1x64x512xbf16>
    %151 = vector.shape_cast %150 : vector<1x64x512xbf16> to vector<64x512xbf16>
    %cst_106 = arith.constant dense<0.000000e+00> : vector<8x512xf32>
    %152 = tpu.matmul %149, %151, %cst_106 {dimension_numbers = #tpu.dot_dimension_numbers<[1], [0], [0], [1], [0, 0, 1, 1], [], []>} : vector<8x64xbf16>, vector<64x512xbf16>, vector<8x512xf32> -> vector<8x512xf32>
    %c0_107 = arith.constant 0 : index
    %c0_108 = arith.constant 0 : index
    %153 = vector.load %arg10[%c0_107, %c0_108] : memref<1x512xf32, #tpu.memory_space<vmem>>, vector<1x512xf32>
    %154 = vector.broadcast %153 : vector<1x512xf32> to vector<8x512xf32>
    %155 = arith.addf %152, %154 : vector<8x512xf32>
    %cst_109 = arith.constant 0.000000e+00 : f32
    %156 = vector.broadcast %cst_109 : f32 to vector<8x512xf32>
    %157 = arith.maximumf %155, %156 : vector<8x512xf32>
    %158 = arith.truncf %157 : vector<8x512xf32> to vector<8x512xbf16>
    %c0_110 = arith.constant 0 : index
    %c0_111 = arith.constant 0 : index
    %159 = vector.load %arg11[%c0_110, %c0_111] : memref<512x32xbf16, #tpu.memory_space<vmem>>, vector<512x32xbf16>
    %cst_112 = arith.constant dense<0.000000e+00> : vector<8x32xf32>
    %160 = tpu.matmul %158, %159, %cst_112 {dimension_numbers = #tpu.dot_dimension_numbers<[1], [0], [0], [1], [0, 0, 1, 1], [], []>} : vector<8x512xbf16>, vector<512x32xbf16>, vector<8x32xf32> -> vector<8x32xf32>
    %c0_113 = arith.constant 0 : index
    %c0_114 = arith.constant 0 : index
    %161 = vector.load %arg12[%c0_113, %c0_114] : memref<1x32xf32, #tpu.memory_space<vmem>>, vector<1x32xf32>
    %162 = vector.broadcast %161 : vector<1x32xf32> to vector<8x32xf32>
    %163 = arith.addf %160, %162 : vector<8x32xf32>
    %c0_115 = arith.constant 0 : index
    %c0_116 = arith.constant 0 : index
    %164 = vector.load %arg13[%c0_115, %c0_116] : memref<32x32xf32, #tpu.memory_space<vmem>>, vector<32x32xf32>
    %165 = vector.shape_cast %164 : vector<32x32xf32> to vector<1x32x32xf32>
    %cst_117 = arith.constant 5.000000e-01 : f32
    %166 = vector.broadcast %cst_117 : f32 to vector<1x32x32xf32>
    %167 = arith.cmpf ogt, %165, %166 : vector<1x32x32xf32>
    %168 = vector.shape_cast %163 : vector<8x32xf32> to vector<8x1x32xf32>
    %cst_118 = arith.constant -1.000000e+30 : f32
    %169 = vector.shape_cast %167 : vector<1x32x32xi1> to vector<1x32x32xi1>
    %170 = vector.broadcast %169 : vector<1x32x32xi1> to vector<8x32x32xi1>
    %171 = vector.shape_cast %168 : vector<8x1x32xf32> to vector<8x1x32xf32>
    %172 = vector.broadcast %171 : vector<8x1x32xf32> to vector<8x32x32xf32>
    %173 = vector.broadcast %cst_118 : f32 to vector<8x32x32xf32>
    %174 = arith.select %170, %172, %173 : vector<8x32x32xi1>, vector<8x32x32xf32>
    %cst_119 = arith.constant dense<0xFF800000> : vector<8x32xf32>
    %175 = vector.multi_reduction <maximumf>, %174, %cst_119 [2] : vector<8x32x32xf32> to vector<8x32xf32>
    %176 = arith.subf %163, %175 : vector<8x32xf32>
    %177 = math.exp %176 : vector<8x32xf32>
    %cst_120 = arith.constant dense<0.000000e+00> : vector<8x32xf32>
    %178 = tpu.matmul %177, %164, %cst_120 {dimension_numbers = #tpu.dot_dimension_numbers<[1], [0], [0], [1], [0, 0, 1, 1], [], []>} : vector<8x32xf32>, vector<32x32xf32>, vector<8x32xf32> -> vector<8x32xf32>
    %179 = arith.divf %177, %178 : vector<8x32xf32>
    %180 = vector.extract_strided_slice %179 {offsets = [0, 0], sizes = [2, 32], strides = [1, 1]} : vector<8x32xf32> to vector<2x32xf32>
    %c0_121 = arith.constant 0 : index
    %c0_122 = arith.constant 0 : index
    %181 = vector.load %arg14[%c0_121, %c0_122] : memref<2x32xf32, #tpu.memory_space<vmem>>, vector<2x32xf32>
    tpu.vector_store %arg14[%c0_121, %c0_122], %180 {strides = array<i32>} : memref<2x32xf32, #tpu.memory_space<vmem>>, vector<2x32xf32>,
    return
  }
}

</mosaic_0001>

<bundles_post_ra>
// kernel: cnn_dist_q_forward.1
= control target key start
LH: loop header
LB: loop body
LE: loop exit
PB: predicated region body
PF: predicated region fallthrough
CT: control target
= control target key end

     0   :  { %vm868_vm0 = vcmask 261120   ;;  %vm852_vm1 = vcmask 1043456   ;;  %vm5144_vm2 = vmmov 0   ;;  %vm2107_vm3 = vcmask 195584   ;;  %s6181_s1 = inlined_call_operand.vmem [shape: bf16[256,32], index: 1, kind: input, shape index: {}]   ;;  %s6182_s0 = inlined_call_operand.vmem [shape: bf16[128,256], index: 0, kind: input, shape index: {}]   ;;  %s6183_s3 = inlined_call_operand.vmem [shape: bf16[384,128], index: 3, kind: input, shape index: {}]   ;;  %s6184_s2 = inlined_call_operand.vmem [shape: f32[1,32], index: 2, kind: input, shape index: {}]   ;;  %s6185_s4 = inlined_call_operand.vmem [shape: bf16[16,32,64], index: 4, kind: input, shape index: {}]   ;;  %s6186_s6 = inlined_call_operand.vmem [shape: bf16[72,24], index: 6, kind: input, shape index: {}]   ;;  %s6187_s7 = inlined_call_operand.vmem [shape: bf16[9,64,64], index: 7, kind: input, shape index: {}]   ;;  %s6188_s5 = inlined_call_operand.vmem [shape: f32[1,64], index: 5, kind: input, shape index: {}]   ;;  %s6189_s9 = inlined_call_operand.vmem [shape: bf16[1,64,512], index: 9, kind: input, shape index: {}]   ;;  %s6190_s11 = inlined_call_operand.vmem [shape: bf16[512,32], index: 11, kind: input, shape index: {}]   ;;  %s6191_s8 = inlined_call_operand.vmem [shape: f32[1,64], index: 8, kind: input, shape index: {}]   ;;  %s6192_s10 = inlined_call_operand.vmem [shape: f32[1,512], index: 10, kind: input, shape index: {}]   ;;  %s6193_s13 = inlined_call_operand.vmem [shape: f32[32,32], index: 13, kind: input, shape index: {}]   ;;  %s6194_s12 = inlined_call_operand.vmem [shape: f32[1,32], index: 12, kind: input, shape index: {}]   ;;  %s6195_s14 = inlined_call_operand.vmem [shape: f32[2,32], index: 14, kind: output, shape index: {}]  }
   0x1   :  { %v4946_v0 = vld [vmem:[%s6181_s1 + $0x78] sm:$0xff]   ;;  %v4948_v2 = vld [vmem:[%s6181_s1 + $0x70] sm:$0xff]   ;;  %v4950_v4 = vld [vmem:[%s6181_s1 + $0x68] sm:$0xff]   ;;  %vm2247_vm4 = vcmask 523264   ;;  %vm3744_vm9 = vcmask 130112   ;;  %vm3751_vm10 = vcmask 195712  }
   0x2   :  { %v4947_v1 = vld [vmem:[%s6181_s1 + $0x38] sm:$0xff]   ;;  %4346 = vmatprep.subr.bf16.mxu0 %v4946_v0  ;;  %v4949_v3 = vld [vmem:[%s6181_s1 + $0x30] sm:$0xff]   ;;  %v4951_v5 = vld [vmem:[%s6181_s1 + $0x28] sm:$0xff]   ;;  %vm3758_vm11 = vcmask 261312   ;;  %vm3893_vm12 = vcmask 1041409   ;;  %vm3895_vm13 = vcmask 1042434  }
   0x3   :  { %4347 = vmatpush3.bf16.msra.mxu0 %v4947_v1  ;;  %v4952_v6 = vld [vmem:[%s6181_s1 + $0x60] sm:$0xff]   ;;  %v4954_v8 = vld [vmem:[%s6181_s1 + $0x58] sm:$0xff]   ;;  %v4956_v10 = vld [vmem:[%s6181_s1 + $0x50] sm:$0xff]   ;;  %vm3897_vm14 = vcmask 1043459   ;;  %vm3899_vm15 = vcmask 1044484  }
   0x4   :  { %4348 = vmatprep.subr.bf16.mxu0 %v4948_v2  ;;  %v4953_v7 = vld [vmem:[%s6181_s1 + $0x20] sm:$0xff]   ;;  %v4955_v9 = vld [vmem:[%s6181_s1 + $0x18] sm:$0xff]   ;;  %v4957_v12 = vld [vmem:[%s6181_s1 + $0x10] sm:$0xff]  }
   0x5   :  { %v4964_v11 = vld [vmem:[%s6182_s0 + $0x4] ss:$8 sps:$4 sm:$0xff]   ;;  %v4962_v17 = vld [vmem:[%s6182_s0] ss:$8 sps:$4 sm:$0xff]   ;;  %v4965_v18 = vld [vmem:[%s6182_s0 + $0x14] ss:$8 sps:$4 sm:$0xff]  }
   0x6   :  { %311 = vmatprep.mubr.bf16.mxu0 %v4964_v11  ;;  %v4958_v13 = vld [vmem:[%s6181_s1 + $0x48] sm:$0xff]   ;;  %v4960_v15 = vld [vmem:[%s6181_s1 + $0x40] sm:$0xff]   ;;  %v4967_v19 = vld [vmem:[%s6182_s0 + $0x10] ss:$8 sps:$4 sm:$0xff]  }
   0x7   :  { %4349 = vmatpush3.bf16.msra.mxu0 %v4949_v3  ;;  %v4959_v14 = vld [vmem:[%s6181_s1 + $0x8] sm:$0xff]   ;;  %v4961_v16 = vld [vmem:[%s6181_s1] sm:$0xff]   ;;  %v4971_v22 = vld [vmem:[%s6182_s0 + $0x34] ss:$8 sps:$4 sm:$0xff]  }
   0x8   :  { %4350 = vmatprep.subr.bf16.mxu0 %v4950_v4  ;;  %v4968_v20 = vld [vmem:[%s6182_s0 + $0x24] ss:$8 sps:$4 sm:$0xff]   ;;  %v4970_v21 = vld [vmem:[%s6182_s0 + $0x20] ss:$8 sps:$4 sm:$0xff]   ;;  %v4973_v23 = vld [vmem:[%s6182_s0 + $0x30] ss:$8 sps:$4 sm:$0xff]  }
   0x9   :  { %v4974_v24 = vld [vmem:[%s6182_s0 + $0x44] ss:$8 sps:$4 sm:$0xff]   ;;  %v4976_v25 = vld [vmem:[%s6182_s0 + $0x40] ss:$8 sps:$4 sm:$0xff]   ;;  %v4977_v26 = vld [vmem:[%s6182_s0 + $0x54] ss:$8 sps:$4 sm:$0xff]  }
   0xa   :  { %v4979_v27 = vld [vmem:[%s6182_s0 + $0x50] ss:$8 sps:$4 sm:$0xff]   ;;  %v4980_v28 = vld [vmem:[%s6182_s0 + $0x64] ss:$8 sps:$4 sm:$0xff]   ;;  %v4982_v29 = vld [vmem:[%s6182_s0 + $0x60] ss:$8 sps:$4 sm:$0xff]  }
   0xb   :  { %4351 = vmatpush3.bf16.msra.mxu0 %v4951_v5  ;;  %v4983_v30 = vld [vmem:[%s6182_s0 + $0x74] ss:$8 sps:$4 sm:$0xff]   ;;  %v4985_v31 = vld [vmem:[%s6182_s0 + $0x70] ss:$8 sps:$4 sm:$0xff]   ;;  %v4986_v32 = vld [vmem:[%s6183_s3] sm:$0xff]  }
   0xc   :  { %4352 = vmatprep.subr.bf16.mxu0 %v4952_v6  ;;  %4623 = vmatprep.mubr.bf16.mxu1 %v4986_v32  ;;  %v5324_v36 = vld [vmem:[%s6184_s2] ss:$0 sm:$0xff] }
   0xf   :  { %4353 = vmatpush3.bf16.msra.mxu0 %v4953_v7 }
  0x10   :  { %4354 = vmatprep.subr.bf16.mxu0 %v4954_v8 }
  0x13   :  { %4355 = vmatpush3.bf16.msra.mxu0 %v4955_v9 }
  0x14   :  { %4356 = vmatprep.subr.bf16.mxu0 %v4956_v10 }
  0x17   :  { %4357 = vmatpush3.bf16.msra.mxu0 %v4957_v12 }
  0x18   :  { %4358 = vmatprep.subr.bf16.mxu0 %v4958_v13 }
  0x1b   :  { %4359 = vmatpush3.bf16.msra.mxu0 %v4959_v14 }
  0x1c   :  { %4360 = vmatprep.subr.bf16.mxu0 %v4960_v15 }
  0x1f   :  { %4361 = vmatpush3.bf16.msra.mxu0 %v4961_v16 }
  0x22   :  { %312 = vmatmul.mubr.bf16.vlgmr.msra.gmra.mxu0 %v4962_v17 }
  0x23   :  { %319 = vmatprep.mubr.bf16.mxu0 %v4965_v18 }
  0x2a   :  { %320 = vmatmul.mubr.bf16.gmra.mxu0 %v4967_v19 }
  0x2b   :  { %327 = vmatprep.mubr.bf16.mxu0 %v4968_v20 }
  0x32   :  { %328 = vmatmul.mubr.bf16.gmra.mxu0 %v4970_v21 }
  0x33   :  { %335 = vmatprep.mubr.bf16.mxu0 %v4971_v22 }
  0x3a   :  { %336 = vmatmul.mubr.bf16.gmra.mxu0 %v4973_v23 }
  0x3b   :  { %343 = vmatprep.mubr.bf16.mxu0 %v4974_v24 }
  0x42   :  { %344 = vmatmul.mubr.bf16.gmra.mxu0 %v4976_v25 }
  0x43   :  { %351 = vmatprep.mubr.bf16.mxu0 %v4977_v26 }
  0x4a   :  { %352 = vmatmul.mubr.bf16.gmra.mxu0 %v4979_v27 }
  0x4b   :  { %359 = vmatprep.mubr.bf16.mxu0 %v4980_v28 }
  0x52   :  { %360 = vmatmul.mubr.bf16.gmra.mxu0 %v4982_v29 }
  0x53   :  { %367 = vmatprep.mubr.bf16.mxu0 %v4983_v30 }
  0x5a   :  { %368 = vmatmul.mubr.bf16.gmra.mxu0 %v4985_v31 }
  0xe2   :  { %v4362_v33 = vpop.f32.mrf.mxu0 }
  0xe4   :  { %v4363_v34 = vpop.f32.mrf.mxu0 }
  0xe5   :  { %v4364_v35 = vadd.f32 %v4363_v34, %v4362_v33 }
  0xe6   :  { %v4365_v37 = vpop.f32.mrf.mxu0 }
  0xe7   :  { %v314_v39 = vadd.f32 %v4364_v35, %v5324_v36 }
  0xe8   :  { %v4366_v38 = vpop.f32.mrf.mxu0 }
  0xe9   :  { %v4367_v40 = vadd.f32 %v4366_v38, %v4365_v37  ;;  %v376_v44 = vmax.f32 %v314_v39, 0.0 }
  0xea   :  { %v4368_v41 = vpop.f32.mrf.mxu0 }
  0xeb   :  { %v317_v42 = vadd.f32 %v4367_v40, %v5324_v36 }
  0xec   :  { %v4369_v43 = vpop.f32.mrf.mxu0 }
  0xed   :  { %v377_v45 = vmax.f32 %v317_v42, 0.0  ;;  %v4370_v46 = vadd.f32 %v4369_v43, %v4368_v41 }
  0xee   :  { %v4371_v47 = vpop.f32.mrf.mxu0 }
  0xef   :  { %v5328_v48 = vpack.c.bf16 %v377_v45, %v376_v44  ;;  %v322_v50 = vadd.f32 %v4370_v46, %v5324_v36 }
  0xf0   :  { %v4372_v49 = vpop.f32.mrf.mxu0 }
  0xf1   :  { %v4373_v51 = vadd.f32 %v4372_v49, %v4371_v47  ;;  %v378_v55 = vmax.f32 %v322_v50, 0.0 }
  0xf2   :  { %v4374_v52 = vpop.f32.mrf.mxu0 }
  0xf3   :  { %v325_v53 = vadd.f32 %v4373_v51, %v5324_v36 }
  0xf4   :  { %v4375_v54 = vpop.f32.mrf.mxu0 }
  0xf5   :  { %v379_v56 = vmax.f32 %v325_v53, 0.0  ;;  %v4376_v11 = vadd.f32 %v4375_v54, %v4374_v52  ;;  %v5011_v52 = vld [vmem:[%s6185_s4 + $0x8] sm:$0xff]  }
  0xf6   :  { %v4377_v57 = vpop.f32.mrf.mxu0  ;;  %4679 = vmatprep.subr.bf16.mxu0 %v5011_v52 }
  0xf7   :  { %v5332_v58 = vpack.c.bf16 %v379_v56, %v378_v55  ;;  %v330_v22 = vadd.f32 %v4376_v11, %v5324_v36  ;;  %4680 = vmatpush3.bf16.msra.mxu0 %v5011_v52  ;;  %v5002_v11 = vld [vmem:[%s6183_s3 + $0x80] sm:$0xff]  }
  0xf8   :  { %v4378_v59 = vpop.f32.mrf.mxu0 }
  0xf9   :  { %v4379_v12 = vadd.f32 %v4378_v59, %v4377_v57  ;;  %v380_v35 = vmax.f32 %v330_v22, 0.0  ;;  %v5020_v22 = vld [vmem:[%s6185_s4 + $0x58] sm:$0xff]  }
  0xfa   :  { %v4380_v60 = vpop.f32.mrf.mxu0 }
  0xfb   :  { %v333_v24 = vadd.f32 %v4379_v12, %v5324_v36  ;;  %v5003_v12 = vld [vmem:[%s6183_s3 + $0x88] sm:$0xff]  }
  0xfc   :  { %v4381_v61 = vpop.f32.mrf.mxu0 }
  0xfd   :  { %v4382_v13 = vadd.f32 %v4381_v61, %v4380_v60  ;;  %v381_v38 = vmax.f32 %v333_v24, 0.0  ;;  %v5010_v61 = vld [vmem:[%s6185_s4 + $0x18] sm:$0xff]  }
  0xfe   :  { %v4383_v62 = vpop.f32.mrf.mxu0 }
  0xff   :  { %v338_v25 = vadd.f32 %v4382_v13, %v5324_v36  ;;  %v394_v60 = vpack.c.bf16 %v381_v38, %v380_v35  ;;  %v5004_v13 = vld [vmem:[%s6183_s3 + $0x90] sm:$0xff]  }
 0x100   :  { %v4384_v63 = vpop.f32.mrf.mxu0 }
 0x101   :  { %v4385_v14 = vadd.f32 %v4384_v63, %v4383_v62  ;;  %v382_v39 = vmax.f32 %v338_v25, 0.0  ;;  %v4987_v62 = vld [vmem:[%s6183_s3 + $0x8] sm:$0xff]   ;;  %v4988_v63 = vld [vmem:[%s6183_s3 + $0x10] sm:$0xff]  }
 0x102   :  { %v4386_v0 = vpop.f32.mrf.mxu0 }
 0x103   :  { %v341_v26 = vadd.f32 %v4385_v14, %v5324_v36  ;;  %v5012_v14 = vld [vmem:[%s6185_s4] sm:$0xff]  }
 0x104   :  { %v4387_v1 = vpop.f32.mrf.mxu0  ;;  %4681 = vmatprep.subr.bf16.mxu0 %v5012_v14 }
 0x105   :  { %v4388_v15 = vadd.f32 %v4387_v1, %v4386_v0  ;;  %v383_v40 = vmax.f32 %v341_v26, 0.0  ;;  %v4990_v0 = vld [vmem:[%s6183_s3 + $0x20] sm:$0xff]   ;;  %v4992_v1 = vld [vmem:[%s6183_s3 + $0x30] sm:$0xff]   ;;  %4682 = vmatpush3.bf16.msra.mxu0 %v5012_v14 }
 0x106   :  { %v4389_v2 = vpop.f32.mrf.mxu0 }
 0x107   :  { %v346_v27 = vadd.f32 %v4388_v15, %v5324_v36  ;;  %v5005_v15 = vld [vmem:[%s6183_s3 + $0x98] sm:$0xff]  }
 0x108   :  { %v4390_v3 = vpop.f32.mrf.mxu0 }
 0x109   :  { %v4391_v17 = vadd.f32 %v4390_v3, %v4389_v2  ;;  %v384_v41 = vmax.f32 %v346_v27, 0.0  ;;  %v4993_v2 = vld [vmem:[%s6183_s3 + $0x38] sm:$0xff]   ;;  %v4994_v3 = vld [vmem:[%s6183_s3 + $0x40] sm:$0xff]  }
 0x10a   :  { %v4392_v4 = vpop.f32.mrf.mxu0 }
 0x10b   :  { %v349_v29 = vadd.f32 %v4391_v17, %v5324_v36  ;;  %v5013_v17 = vld [vmem:[%s6185_s4 + $0x10] sm:$0xff]  }
 0x10c   :  { %v4393_v5 = vpop.f32.mrf.mxu0 }
 0x10d   :  { %v4394_v18 = vadd.f32 %v4393_v5, %v4392_v4  ;;  %v385_v43 = vmax.f32 %v349_v29, 0.0  ;;  %v4995_v4 = vld [vmem:[%s6183_s3 + $0x48] sm:$0xff]   ;;  %v4996_v5 = vld [vmem:[%s6183_s3 + $0x50] sm:$0xff]  }
 0x10e   :  { %v4395_v6 = vpop.f32.mrf.mxu0 }
 0x10f   :  { %v354_v30 = vadd.f32 %v4394_v18, %v5324_v36  ;;  %v396_v59 = vpack.c.bf16 %v385_v43, %v384_v41  ;;  %v5007_v18 = vld [vmem:[%s6183_s3 + $0xa8] sm:$0xff]   ;;  %v5021_v43 = vld [vmem:[%s6185_s4 + $0x50] sm:$0xff]  }
 0x110   :  { %v4396_v7 = vpop.f32.mrf.mxu0 }
 0x111   :  { %v4397_v19 = vadd.f32 %v4396_v7, %v4395_v6  ;;  %v386_v44 = vmax.f32 %v354_v30, 0.0  ;;  %v4997_v6 = vld [vmem:[%s6183_s3 + $0x58] sm:$0xff]   ;;  %v4998_v7 = vld [vmem:[%s6183_s3 + $0x60] sm:$0xff]  }
 0x112   :  { %v4398_v8 = vpop.f32.mrf.mxu0  ;;  %v5015_v30 = vld [vmem:[%s6185_s4 + $0x20] sm:$0xff]  }
 0x113   :  { %v357_v32 = vadd.f32 %v4397_v19, %v5324_v36  ;;  %v5008_v19 = vld [vmem:[%s6183_s3 + $0xb0] sm:$0xff]  }
 0x114   :  { %v4399_v9 = vpop.f32.mrf.mxu0 }
 0x115   :  { %v4400_v20 = vadd.f32 %v4399_v9, %v4398_v8  ;;  %v387_v47 = vmax.f32 %v357_v32, 0.0  ;;  %v4999_v8 = vld [vmem:[%s6183_s3 + $0x68] sm:$0xff]   ;;  %v5000_v9 = vld [vmem:[%s6183_s3 + $0x70] sm:$0xff]  }
 0x116   :  { %v4401_v10 = vpop.f32.mrf.mxu0 }
 0x117   :  { %v362_v33 = vadd.f32 %v4400_v20, %v5324_v36  ;;  %v397_v57 = vpack.c.bf16 %v387_v47, %v386_v44  ;;  %v5014_v20 = vld [vmem:[%s6185_s4 + $0x28] sm:$0xff]  }
 0x118   :  { %v4402_v16 = vpop.f32.mrf.mxu0  ;;  %4687 = vmatprep.subr.bf16.mxu0 %v5014_v20 }
 0x119   :  { %v4403_v23 = vadd.f32 %v4402_v16, %v4401_v10  ;;  %v388_v49 = vmax.f32 %v362_v33, 0.0  ;;  %v5001_v10 = vld [vmem:[%s6183_s3 + $0x78] sm:$0xff]   ;;  %v5006_v16 = vld [vmem:[%s6183_s3 + $0xa0] sm:$0xff]  }
 0x11a   :  { %v4404_v21 = vpop.f32.mrf.mxu0  ;;  %v5016_v33 = vld [vmem:[%s6185_s4 + $0x38] sm:$0xff]  }
 0x11b   :  { %v365_v37 = vadd.f32 %v4403_v23, %v5324_v36 }
 0x11c   :  { %v4405_v28 = vpop.f32.mrf.mxu0 }
 0x11d   :  { %v4406_v31 = vadd.f32 %v4405_v28, %v4404_v21  ;;  %v389_v50 = vmax.f32 %v365_v37, 0.0  ;;  %v5009_v21 = vld [vmem:[%s6183_s3 + $0xb8] sm:$0xff]  }
 0x11e   :  { %v4407_v34 = vpop.f32.mrf.mxu0 }
 0x11f   :  { %v370_v45 = vadd.f32 %v4406_v31, %v5324_v36  ;;  %v398_v56 = vpack.c.bf16 %v389_v50, %v388_v49  ;;  %v5017_v49 = vld [vmem:[%s6185_s4 + $0x30] sm:$0xff]   ;;  %v5024_v50 = vld [vmem:[%s6185_s4 + $0x78] sm:$0xff]  }
 0x120   :  { %v4408_v42 = vpop.f32.mrf.mxu0 }
 0x121   :  { %v4409_v46 = vadd.f32 %v4408_v42, %v4407_v34  ;;  %v390_v53 = vmax.f32 %v370_v45, 0.0 }
 0x123   :  { %v373_v51 = vadd.f32 %v4409_v46, %v5324_v36  ;;  %v395_v36 = vpack.c.bf16 %v383_v40, %v382_v39 }
 0x125   :  { %v391_v54 = vmax.f32 %v373_v51, 0.0 }
 0x127   :  { %v399_v55 = vpack.c.bf16 %v391_v54, %v390_v53 }
 0x129   :  { %4607 = vmatprep.subr.bf16.mxu1 %v399_v55 }
 0x12a   :  { %4608 = vmatpush3.bf16.msra.mxu1 %v399_v55 }
 0x12b   :  { %4609 = vmatprep.subr.bf16.mxu1 %v398_v56 }
 0x12e   :  { %4610 = vmatpush3.bf16.msra.mxu1 %v398_v56  ;;  %v5018_v56 = vld [vmem:[%s6185_s4 + $0x48] sm:$0xff]  }
 0x12f   :  { %4611 = vmatprep.subr.bf16.mxu1 %v397_v57 }
 0x132   :  { %4612 = vmatpush3.bf16.msra.mxu1 %v397_v57 }
 0x133   :  { %4613 = vmatprep.subr.bf16.mxu1 %v396_v59 }
 0x136   :  { %4614 = vmatpush3.bf16.msra.mxu1 %v396_v59 }
 0x137   :  { %4615 = vmatprep.subr.bf16.mxu1 %v395_v36 }
 0x13a   :  { %4616 = vmatpush3.bf16.msra.mxu1 %v395_v36 }
 0x13b   :  { %4617 = vmatprep.subr.bf16.mxu1 %v394_v60 }
 0x13e   :  { %4618 = vmatpush3.bf16.msra.mxu1 %v394_v60  ;;  %v5019_v60 = vld [vmem:[%s6185_s4 + $0x40] sm:$0xff]  }
 0x13f   :  { %4619 = vmatprep.subr.bf16.mxu1 %v5332_v58 }
 0x142   :  { %4620 = vmatpush3.bf16.msra.mxu1 %v5332_v58  ;;  %v4989_v58 = vld [vmem:[%s6183_s3 + $0x18] sm:$0xff]  }
 0x143   :  { %4621 = vmatprep.subr.bf16.mxu1 %v5328_v48 }
 0x146   :  { %4622 = vmatpush3.bf16.msra.mxu1 %v5328_v48  ;;  %v4991_v48 = vld [vmem:[%s6183_s3 + $0x28] sm:$0xff]  }
 0x147   :  { %4671 = vmatprep.subr.bf16.mxu1 %v5010_v61 }
 0x149   :  { %4624 = vmatmul.mubr.bf16.vlgmr.msra.gmra.mxu1 %v4987_v62 }
 0x14a   :  { %4627 = vmatprep.mubr.bf16.mxu1 %v4988_v63  ;;  %4672 = vmatpush3.bf16.msra.mxu1 %v5010_v61  ;;  %v5022_v63 = vld [vmem:[%s6185_s4 + $0x68] sm:$0xff]  }
 0x14b   :  { %4673 = vmatprep.subr.bf16.mxu1 %v5013_v17 }
 0x14e   :  { %4674 = vmatpush3.bf16.msra.mxu1 %v5013_v17 }
 0x14f   :  { %4711 = vmatprep.subr.bf16.mxu1 %v5020_v22 }
 0x151   :  { %4628 = vmatmul.mubr.bf16.gmra.mxu1 %v4989_v58 }
 0x152   :  { %4631 = vmatprep.mubr.bf16.mxu1 %v4990_v0 }
 0x159   :  { %4632 = vmatmul.mubr.bf16.gmra.mxu1 %v4991_v48 }
 0x15a   :  { %4635 = vmatprep.mubr.bf16.mxu1 %v4992_v1 }
 0x161   :  { %4636 = vmatmul.mubr.bf16.gmra.mxu1 %v4993_v2  ;;  %v5023_v2 = vld [vmem:[%s6185_s4 + $0x60] sm:$0xff]  }
 0x162   :  { %4639 = vmatprep.mubr.bf16.mxu1 %v4994_v3 }
 0x169   :  { %4640 = vmatmul.mubr.bf16.gmra.mxu1 %v4995_v4 }
 0x16a   :  { %4643 = vmatprep.mubr.bf16.mxu1 %v4996_v5 }
 0x171   :  { %4644 = vmatmul.mubr.bf16.gmra.mxu1 %v4997_v6 }
 0x172   :  { %4647 = vmatprep.mubr.bf16.mxu1 %v4998_v7 }
 0x179   :  { %4648 = vmatmul.mubr.bf16.gmra.mxu1 %v4999_v8 }
 0x17a   :  { %4651 = vmatprep.mubr.bf16.mxu1 %v5000_v9  ;;  %v5025_v9 = vld [vmem:[%s6185_s4 + $0x70] sm:$0xff]  }
 0x181   :  { %4652 = vmatmul.mubr.bf16.gmra.mxu1 %v5001_v10  ;;  %v5026_v10 = vld [vmem:[%s6185_s4 + $0x88] sm:$0xff]  }
 0x182   :  { %4655 = vmatprep.mubr.bf16.mxu1 %v5002_v11 }
 0x189   :  { %4656 = vmatmul.mubr.bf16.gmra.mxu1 %v5003_v12 }
 0x18a   :  { %4659 = vmatprep.mubr.bf16.mxu1 %v5004_v13 }
 0x191   :  { %4660 = vmatmul.mubr.bf16.gmra.mxu1 %v5005_v15  ;;  %v5027_v15 = vld [vmem:[%s6185_s4 + $0x80] sm:$0xff]  }
 0x192   :  { %4663 = vmatprep.mubr.bf16.mxu1 %v5006_v16  ;;  %v5028_v16 = vld [vmem:[%s6185_s4 + $0x98] sm:$0xff]  }
 0x199   :  { %4664 = vmatmul.mubr.bf16.gmra.mxu1 %v5007_v18 }
 0x19a   :  { %4667 = vmatprep.mubr.bf16.mxu1 %v5008_v19 }
 0x1a1   :  { %4668 = vmatmul.mubr.bf16.gmra.mxu1 %v5009_v21 }
 0x209   :  { %v4625_v23 = vpop.f32.mrf.mxu1 }
 0x20b   :  { %v626_v24 = vpop.f32.mrf.mxu1 }
 0x20d   :  { %v4626_v25 = vpop.f32.mrf.mxu1 }
 0x20e   :  { %v818_v28 = vpack.c.bf16 %v4626_v25, %v4625_v23  ;;  %v5030_v23 = vld [vmem:[%s6185_s4 + $0xa8] sm:$0xff]  }
 0x20f   :  { %v629_v26 = vpop.f32.mrf.mxu1 }
 0x210   :  { %v817_v27 = vpack.c.bf16 %v629_v26, %v626_v24  ;;  %v853_v39 = vrot.slane %v818_v28, 4 }
 0x211   :  { %v4629_v29 = vpop.f32.mrf.mxu1 }
 0x212   :  { %4683 = vmatprep.mubr.msk.bf16.mxu0 %vm868_vm0, %v817_v27  ;;  %v5032_v27 = vld [vmem:[%s6185_s4 + $0xb8] sm:$0xff]  }
 0x213   :  { %v642_v31 = vpop.f32.mrf.mxu1  ;;  %4684 = vmatmul.mubr.msk.bf16.vlgmr.msra.gmra.mxu0 %vm868_vm0, %v818_v28 }
 0x214   :  { %4688 = vmatpush3.bf16.msra.mxu0 %v5014_v20 }
 0x215   :  { %v4630_v32 = vpop.f32.mrf.mxu1  ;;  %4689 = vmatprep.subr.bf16.mxu0 %v5015_v30 }
 0x216   :  { %v820_v34 = vpack.c.bf16 %v4630_v32, %v4629_v29 }
 0x217   :  { %v645_v35 = vpop.f32.mrf.mxu1 }
 0x218   :  { %v819_v37 = vpack.c.bf16 %v645_v35, %v642_v31  ;;  %4691 = vmatprep.mubr.msk.bf16.mxu0 %vm868_vm0, %v820_v34  ;;  %4690 = vmatpush3.bf16.msra.mxu0 %v5015_v30  ;;  %v5031_v30 = vld [vmem:[%s6185_s4 + $0xa0] sm:$0xff]  }
 0x219   :  { %v4633_v38 = vpop.f32.mrf.mxu1  ;;  %4695 = vmatprep.subr.bf16.mxu0 %v5016_v33 }
 0x21a   :  { %v854_v40 = vrot.slane %v819_v37, 4 }
 0x21b   :  { %v658_v41 = vpop.f32.mrf.mxu1 }
 0x21c   :  { %v855_v42 = vsel %vm852_vm1, %v853_v39, %v854_v40 }
 0x21d   :  { %v4634_v44 = vpop.f32.mrf.mxu1  ;;  %4675 = vmatprep.mubr.msk.bf16.mxu1 %vm868_vm0, %v855_v42 }
 0x21e   :  { %v822_v45 = vpack.c.bf16 %v4634_v44, %v4633_v38  ;;  %4676 = vmatmul.mubr.msk.bf16.vlgmr.msra.gmra.mxu1 %vm868_vm0, %v854_v40 }
 0x21f   :  { %v661_v46 = vpop.f32.mrf.mxu1  ;;  %4712 = vmatpush3.bf16.msra.mxu1 %v5020_v22  ;;  %v5029_v22 = vld [vmem:[%s6185_s4 + $0x90] sm:$0xff]  }
 0x220   :  { %v821_v47 = vpack.c.bf16 %v661_v46, %v658_v41  ;;  %4713 = vmatprep.subr.bf16.mxu1 %v5021_v43  ;;  %v1071_v52 = vrot.slane %v822_v45, 4 }
 0x221   :  { %v4637_v51 = vpop.f32.mrf.mxu1 }
 0x222   :  { %v1070_v53 = vrot.slane %v821_v47, 4  ;;  %4692 = vmatmul.mubr.msk.bf16.vlgmr.msra.gmra.mxu0 %vm868_vm0, %v821_v47 }
 0x223   :  { %v674_v54 = vpop.f32.mrf.mxu1  ;;  %4696 = vmatpush3.bf16.msra.mxu0 %v5016_v33  ;;  %4714 = vmatpush3.bf16.msra.mxu1 %v5021_v43  ;;  %v5034_v33 = vld [vmem:[%s6185_s4 + $0xc8] sm:$0xff]   ;;  %v5033_v43 = vld [vmem:[%s6185_s4 + $0xb0] sm:$0xff]  }
 0x224   :  { %v1072_v55 = vsel %vm852_vm1, %v1070_v53, %v1071_v52  ;;  %4697 = vmatprep.subr.bf16.mxu0 %v5017_v49  ;;  %4727 = vmatprep.subr.bf16.mxu1 %v5024_v50 }
 0x225   :  { %v4638_v57 = vpop.f32.mrf.mxu1  ;;  %4699 = vmatprep.mubr.msk.bf16.mxu0 %vm868_vm0, %v1072_v55 }
 0x226   :  { %v824_v0 = vpack.c.bf16 %v4638_v57, %v4637_v51  ;;  %v5038_v57 = vld [vmem:[%s6185_s4 + $0xe8] sm:$0xff]  }
 0x227   :  { %v677_v59 = vpop.f32.mrf.mxu1  ;;  %4698 = vmatpush3.bf16.msra.mxu0 %v5017_v49  ;;  %v5035_v49 = vld [vmem:[%s6185_s4 + $0xc0] sm:$0xff]  }
 0x228   :  { %v823_v36 = vpack.c.bf16 %v677_v59, %v674_v54  ;;  %4703 = vmatprep.subr.bf16.mxu0 %v5018_v56  ;;  %v1223_v5 = vrot.slane %v824_v0, 4 }
 0x229   :  { %v4641_v61 = vpop.f32.mrf.mxu1 }
 0x22a   :  { %4700 = vmatmul.mubr.msk.bf16.vlgmr.msra.gmra.mxu0 %vm868_vm0, %v1071_v52 }
 0x22b   :  { %v690_v62 = vpop.f32.mrf.mxu1  ;;  %4704 = vmatpush3.bf16.msra.mxu0 %v5018_v56  ;;  %4707 = vmatprep.mubr.msk.bf16.mxu0 %vm868_vm0, %v823_v36  ;;  %v5037_v56 = vld [vmem:[%s6185_s4 + $0xd0] sm:$0xff]  }
 0x22c   :  { %4705 = vmatprep.subr.bf16.mxu0 %v5019_v60 }
 0x22d   :  { %v4642_v58 = vpop.f32.mrf.mxu1 }
 0x22e   :  { %v826_v3 = vpack.c.bf16 %v4642_v58, %v4641_v61  ;;  %v5040_v61 = vld [vmem:[%s6185_s4 + $0xf8] sm:$0xff]   ;;  %v5039_v58 = vld [vmem:[%s6185_s4 + $0xe0] sm:$0xff]  }
 0x22f   :  { %v693_v48 = vpop.f32.mrf.mxu1  ;;  %4706 = vmatpush3.bf16.msra.mxu0 %v5019_v60 }
 0x230   :  { %v825_v1 = vpack.c.bf16 %v693_v48, %v690_v62  ;;  %4719 = vmatprep.subr.bf16.mxu0 %v5022_v63 }
 0x231   :  { %v4645_v4 = vpop.f32.mrf.mxu1 }
 0x232   :  { %v1224_v6 = vrot.slane %v825_v1, 4  ;;  %4708 = vmatmul.mubr.msk.bf16.vlgmr.msra.gmra.mxu0 %vm868_vm0, %v824_v0 }
 0x233   :  { %v706_v7 = vpop.f32.mrf.mxu1  ;;  %4720 = vmatpush3.bf16.msra.mxu0 %v5022_v63  ;;  %4723 = vmatprep.mubr.msk.bf16.mxu0 %vm868_vm0, %v826_v3 }
 0x234   :  { %v1225_v8 = vsel %vm852_vm1, %v1223_v5, %v1224_v6  ;;  %4721 = vmatprep.subr.bf16.mxu0 %v5023_v2 }
 0x235   :  { %v4646_v11 = vpop.f32.mrf.mxu1  ;;  %4715 = vmatprep.mubr.msk.bf16.mxu1 %vm868_vm0, %v1225_v8 }
 0x236   :  { %v828_v12 = vpack.c.bf16 %v4646_v11, %v4645_v4  ;;  %4716 = vmatmul.mubr.msk.bf16.vlgmr.msra.gmra.mxu1 %vm868_vm0, %v1224_v6 }
 0x237   :  { %v709_v13 = vpop.f32.mrf.mxu1  ;;  %4722 = vmatpush3.bf16.msra.mxu0 %v5023_v2  ;;  %4728 = vmatpush3.bf16.msra.mxu1 %v5024_v50  ;;  %v5036_v50 = vld [vmem:[%s6185_s4 + $0xd8] sm:$0xff]  }
 0x238   :  { %v827_v14 = vpack.c.bf16 %v709_v13, %v706_v7  ;;  %4729 = vmatprep.subr.bf16.mxu1 %v5025_v9  ;;  %4735 = vmatprep.subr.bf16.mxu0 %v5026_v10  ;;  %v1377_v18 = vrot.slane %v828_v12, 4 }
 0x239   :  { %v4649_v17 = vpop.f32.mrf.mxu1 }
 0x23a   :  { %v1376_v19 = vrot.slane %v827_v14, 4  ;;  %4724 = vmatmul.mubr.msk.bf16.vlgmr.msra.gmra.mxu0 %vm868_vm0, %v827_v14 }
 0x23b   :  { %v722_v20 = vpop.f32.mrf.mxu1  ;;  %4730 = vmatpush3.bf16.msra.mxu1 %v5025_v9  ;;  %4736 = vmatpush3.bf16.msra.mxu0 %v5026_v10  ;;  %v5041_v9 = vld [vmem:[%s6185_s4 + $0xf0] sm:$0xff]  }
 0x23c   :  { %v1378_v21 = vsel %vm852_vm1, %v1376_v19, %v1377_v18  ;;  %4737 = vmatprep.subr.bf16.mxu0 %v5027_v15  ;;  %4743 = vmatprep.subr.bf16.mxu1 %v5028_v16 }
 0x23d   :  { %v4650_v24 = vpop.f32.mrf.mxu1  ;;  %4731 = vmatprep.mubr.msk.bf16.mxu1 %vm868_vm0, %v1378_v21 }
 0x23e   :  { %4732 = vmatmul.mubr.msk.bf16.vlgmr.msra.gmra.mxu1 %vm868_vm0, %v1377_v18  ;;  %v830_v28 = vpack.c.bf16 %v4650_v24, %v4649_v17  ;;  %v5143_v17 = vmov 0.0  }
 0x23f   :  { %v725_v25 = vpop.f32.mrf.mxu1  ;;  %4738 = vmatpush3.bf16.msra.mxu0 %v5027_v15  ;;  %4744 = vmatpush3.bf16.msra.mxu1 %v5028_v16 }
 0x240   :  { %v829_v26 = vpack.c.bf16 %v725_v25, %v722_v20  ;;  %4745 = vmatprep.subr.bf16.mxu1 %v5029_v22  ;;  %4751 = vmatprep.subr.bf16.mxu0 %v5030_v23  ;;  %v1529_v39 = vrot.slane %v830_v28, 4 }
 0x241   :  { %v4653_v29 = vpop.f32.mrf.mxu1 }
 0x242   :  { %4739 = vmatprep.mubr.msk.bf16.mxu0 %vm868_vm0, %v829_v26  ;;  %v5048_v26 = vld [vmem:[%s6187_s7 + $0x38] sm:$0xff]  }
 0x243   :  { %v738_v31 = vpop.f32.mrf.mxu1  ;;  %4740 = vmatmul.mubr.msk.bf16.vlgmr.msra.gmra.mxu0 %vm868_vm0, %v830_v28  ;;  %4746 = vmatpush3.bf16.msra.mxu1 %v5029_v22  ;;  %v5049_v28 = vld [vmem:[%s6187_s7 + $0x30] sm:$0xff]  }
 0x244   :  { %4752 = vmatpush3.bf16.msra.mxu0 %v5030_v23  ;;  %4759 = vmatprep.subr.bf16.mxu1 %v5032_v27 }
 0x245   :  { %v4654_v32 = vpop.f32.mrf.mxu1  ;;  %4753 = vmatprep.subr.bf16.mxu0 %v5031_v30 }
 0x246   :  { %v832_v34 = vpack.c.bf16 %v4654_v32, %v4653_v29 }
 0x247   :  { %v741_v35 = vpop.f32.mrf.mxu1 }
 0x248   :  { %v831_v37 = vpack.c.bf16 %v741_v35, %v738_v31  ;;  %4755 = vmatprep.mubr.msk.bf16.mxu0 %vm868_vm0, %v832_v34  ;;  %4754 = vmatpush3.bf16.msra.mxu0 %v5031_v30 }
 0x249   :  { %v4657_v38 = vpop.f32.mrf.mxu1  ;;  %4767 = vmatprep.subr.bf16.mxu0 %v5034_v33 }
 0x24a   :  { %v1530_v40 = vrot.slane %v831_v37, 4 }
 0x24b   :  { %v754_v41 = vpop.f32.mrf.mxu1 }
 0x24c   :  { %v1531_v42 = vsel %vm852_vm1, %v1529_v39, %v1530_v40 }
 0x24d   :  { %v4658_v44 = vpop.f32.mrf.mxu1  ;;  %4747 = vmatprep.mubr.msk.bf16.mxu1 %vm868_vm0, %v1531_v42 }
 0x24e   :  { %v834_v45 = vpack.c.bf16 %v4658_v44, %v4657_v38  ;;  %4748 = vmatmul.mubr.msk.bf16.vlgmr.msra.gmra.mxu1 %vm868_vm0, %v1530_v40 }
 0x24f   :  { %v757_v46 = vpop.f32.mrf.mxu1  ;;  %4760 = vmatpush3.bf16.msra.mxu1 %v5032_v27 }
 0x250   :  { %v833_v47 = vpack.c.bf16 %v757_v46, %v754_v41  ;;  %4761 = vmatprep.subr.bf16.mxu1 %v5033_v43  ;;  %v1683_v52 = vrot.slane %v834_v45, 4 }
 0x251   :  { %v4661_v51 = vpop.f32.mrf.mxu1 }
 0x252   :  { %v1682_v53 = vrot.slane %v833_v47, 4  ;;  %4756 = vmatmul.mubr.msk.bf16.vlgmr.msra.gmra.mxu0 %vm868_vm0, %v833_v47 }
 0x253   :  { %v770_v54 = vpop.f32.mrf.mxu1  ;;  %4762 = vmatpush3.bf16.msra.mxu1 %v5033_v43  ;;  %4768 = vmatpush3.bf16.msra.mxu0 %v5034_v33 }
 0x254   :  { %v1684_v55 = vsel %vm852_vm1, %v1682_v53, %v1683_v52  ;;  %4769 = vmatprep.subr.bf16.mxu0 %v5035_v49  ;;  %4775 = vmatprep.subr.bf16.mxu1 %v5036_v50 }
 0x255   :  { %v4662_v59 = vpop.f32.mrf.mxu1  ;;  %4763 = vmatprep.mubr.msk.bf16.mxu1 %vm868_vm0, %v1684_v55 }
 0x256   :  { %4764 = vmatmul.mubr.msk.bf16.vlgmr.msra.gmra.mxu1 %vm868_vm0, %v1683_v52  ;;  %v836_v62 = vpack.c.bf16 %v4662_v59, %v4661_v51 }
 0x257   :  { %v773_v36 = vpop.f32.mrf.mxu1  ;;  %4770 = vmatpush3.bf16.msra.mxu0 %v5035_v49  ;;  %4776 = vmatpush3.bf16.msra.mxu1 %v5036_v50 }
 0x258   :  { %v835_v60 = vpack.c.bf16 %v773_v36, %v770_v54  ;;  %4777 = vmatprep.subr.bf16.mxu1 %v5037_v56  ;;  %4783 = vmatprep.subr.bf16.mxu0 %v5038_v57  ;;  %v1835_v5 = vrot.slane %v836_v62, 4 }
 0x259   :  { %v4665_v63 = vpop.f32.mrf.mxu1 }
 0x25a   :  { %4771 = vmatprep.mubr.msk.bf16.mxu0 %vm868_vm0, %v835_v60 }
 0x25b   :  { %v786_v0 = vpop.f32.mrf.mxu1  ;;  %4772 = vmatmul.mubr.msk.bf16.vlgmr.msra.gmra.mxu0 %vm868_vm0, %v836_v62  ;;  %4778 = vmatpush3.bf16.msra.mxu1 %v5037_v56 }
 0x25c   :  { %4784 = vmatpush3.bf16.msra.mxu0 %v5038_v57  ;;  %4791 = vmatprep.subr.bf16.mxu1 %v5040_v61 }
 0x25d   :  { %v4666_v48 = vpop.f32.mrf.mxu1  ;;  %4785 = vmatprep.subr.bf16.mxu0 %v5039_v58 }
 0x25e   :  { %v838_v1 = vpack.c.bf16 %v4666_v48, %v4665_v63 }
 0x25f   :  { %v789_v2 = vpop.f32.mrf.mxu1 }
 0x260   :  { %v837_v3 = vpack.c.bf16 %v789_v2, %v786_v0  ;;  %4787 = vmatprep.mubr.msk.bf16.mxu0 %vm868_vm0, %v838_v1  ;;  %4786 = vmatpush3.bf16.msra.mxu0 %v5039_v58 }
 0x261   :  { %v4669_v4 = vpop.f32.mrf.mxu1  ;;  %4799 = vmatprep.subr.bf16.mxu0 %v5143_v17 }
 0x262   :  { %v1836_v6 = vrot.slane %v837_v3, 4 }
 0x263   :  { %v802_v7 = vpop.f32.mrf.mxu1 }
 0x264   :  { %v1837_v8 = vsel %vm852_vm1, %v1835_v5, %v1836_v6 }
 0x265   :  { %v4670_v10 = vpop.f32.mrf.mxu1  ;;  %4779 = vmatprep.mubr.msk.bf16.mxu1 %vm868_vm0, %v1837_v8 }
 0x266   :  { %v840_v11 = vpack.c.bf16 %v4670_v10, %v4669_v4  ;;  %4780 = vmatmul.mubr.msk.bf16.vlgmr.msra.gmra.mxu1 %vm868_vm0, %v1836_v6 }
 0x267   :  { %v805_v12 = vpop.f32.mrf.mxu1  ;;  %4792 = vmatpush3.bf16.msra.mxu1 %v5040_v61 }
 0x268   :  { %v839_v13 = vpack.c.bf16 %v805_v12, %v802_v7  ;;  %4793 = vmatprep.subr.bf16.mxu1 %v5041_v9  ;;  %v1989_v14 = vrot.slane %v840_v11, 4 }
 0x26a   :  { %v1988_v15 = vrot.slane %v839_v13, 4  ;;  %4788 = vmatmul.mubr.msk.bf16.vlgmr.msra.gmra.mxu0 %vm868_vm0, %v839_v13 }
 0x26b   :  { %4794 = vmatpush3.bf16.msra.mxu1 %v5041_v9  ;;  %4803 = vmatprep.mubr.msk.bf16.mxu0 %vm5144_vm2, %v5143_v17 }
 0x26c   :  { %v1990_v16 = vsel %vm852_vm1, %v1988_v15, %v1989_v14  ;;  %4823 = vmatprep.subr.bf16.mxu1 %v5143_v17 }
 0x26d   :  { %4795 = vmatprep.mubr.msk.bf16.mxu1 %vm868_vm0, %v1990_v16 }
 0x26e   :  { %4796 = vmatmul.mubr.msk.bf16.vlgmr.msra.gmra.mxu1 %vm868_vm0, %v1989_v14 }
 0x26f   :  { %4831 = vmatprep.mubr.msk.bf16.mxu1 %vm5144_vm2, %v5143_v17  ;;  %4824 = vmatpush3.bf16.msra.mxu1 %v5048_v26 }
 0x270   :  { %4825 = vmatprep.subr.bf16.mxu1 %v5143_v17 }
 0x273   :  { %4826 = vmatpush3.bf16.msra.mxu1 %v5049_v28 }
 0x274   :  { %4827 = vmatprep.subr.bf16.mxu1 %v5143_v17 }
 0x2d3   :  { %v4685_v18 = vpop.f32.mrf.mxu0 }
 0x2d5   :  { %v975_v19 = vpop.f32.mrf.mxu0 }
 0x2d7   :  { %v4686_v20 = vpop.f32.mrf.mxu0 }
 0x2d9   :  { %v978_v22 = vpop.f32.mrf.mxu0 }
 0x2de   :  { %v4677_v21 = vpop.f32.mrf.mxu1 }
 0x2df   :  { %v984_v62 = vadd.f32 %v4685_v18, %v4677_v21 }
 0x2e0   :  { %v909_v23 = vpop.f32.mrf.mxu1 }
 0x2e1   :  { %v976_v0 = vadd.f32 %v975_v19, %v909_v23 }
 0x2e2   :  { %v4678_v24 = vpop.f32.mrf.mxu1  ;;  %v4693_v25 = vpop.f32.mrf.mxu0 }
 0x2e3   :  { %v1062_v48 = vadd.f32 %v4693_v25, %v984_v62 }
 0x2e4   :  { %v1046_v27 = vpop.f32.mrf.mxu0  ;;  %v912_v37 = vpop.f32.mrf.mxu1 }
 0x2e5   :  { %v1060_v3 = vadd.f32 %v1046_v27, %v976_v0  ;;  %v979_v7 = vadd.f32 %v978_v22, %v912_v37 }
 0x2e6   :  { %v4694_v29 = vpop.f32.mrf.mxu0 }
 0x2e8   :  { %v1049_v30 = vpop.f32.mrf.mxu0 }
 0x2e9   :  { %v1061_v11 = vadd.f32 %v1049_v30, %v979_v7 }
 0x2ea   :  { %v4701_v31 = vpop.f32.mrf.mxu0 }
 0x2eb   :  { %v1141_v4 = vadd.f32 %v4701_v31, %v1062_v48 }
 0x2ec   :  { %v1125_v32 = vpop.f32.mrf.mxu0 }
 0x2ed   :  { %v1139_v8 = vadd.f32 %v1125_v32, %v1060_v3 }
 0x2ee   :  { %v4702_v33 = vpop.f32.mrf.mxu0 }
 0x2f0   :  { %v1128_v34 = vpop.f32.mrf.mxu0 }
 0x2f1   :  { %v1140_v15 = vadd.f32 %v1128_v34, %v1061_v11 }
 0x2f2   :  { %v4709_v35 = vpop.f32.mrf.mxu0 }
 0x2f3   :  { %v1215_v9 = vadd.f32 %v4709_v35, %v1141_v4 }
 0x2f4   :  { %v1199_v38 = vpop.f32.mrf.mxu0 }
 0x2f5   :  { %v1213_v12 = vadd.f32 %v1199_v38, %v1139_v8 }
 0x2f6   :  { %v4710_v39 = vpop.f32.mrf.mxu0  ;;  %v4717_v40 = vpop.f32.mrf.mxu1 }
 0x2f7   :  { %v1294_v13 = vadd.f32 %v4717_v40, %v1215_v9 }
 0x2f8   :  { %v1202_v41 = vpop.f32.mrf.mxu0  ;;  %v1278_v42 = vpop.f32.mrf.mxu1 }
 0x2f9   :  { %v1292_v16 = vadd.f32 %v1278_v42, %v1213_v12  ;;  %v1214_v19 = vadd.f32 %v1202_v41, %v1140_v15  ;;  %v5042_v12 = vld [vmem:[%s6186_s6] sm:$0xff]   ;;  %v5043_v15 = vld [vmem:[%s6186_s6 + $0x8] sm:$0xff]  }
 0x2fa   :  { %v4718_v43 = vpop.f32.mrf.mxu1  ;;  %v4725_v44 = vpop.f32.mrf.mxu0 }
 0x2fb   :  { %v1368_v18 = vadd.f32 %v4725_v44, %v1294_v13  ;;  %v5047_v13 = vld [vmem:[%s6187_s7 + $0x58] sm:$0xff]  }
 0x2fc   :  { %v1281_v45 = vpop.f32.mrf.mxu1  ;;  %v1352_v46 = vpop.f32.mrf.mxu0 }
 0x2fd   :  { %v1366_v21 = vadd.f32 %v1352_v46, %v1292_v16  ;;  %v1293_v25 = vadd.f32 %v1281_v45, %v1214_v19  ;;  %v5044_v16 = vld [vmem:[%s6186_s6 + $0x10] sm:$0xff]   ;;  %v5051_v19 = vld [vmem:[%s6187_s7 + $0x28] sm:$0xff]  }
 0x2fe   :  { %v4726_v47 = vpop.f32.mrf.mxu0  ;;  %v4733_v49 = vpop.f32.mrf.mxu1  ;;  %4828 = vmatpush3.bf16.msra.mxu1 %v5051_v19  ;;  %v5086_v19 = vld [vmem:[%s6189_s9 + $0x68] ss:$16 sps:$4 sm:$0xff]  }
 0x2ff   :  { %v1447_v23 = vadd.f32 %v4733_v49, %v1368_v18  ;;  %v5045_v18 = vld [vmem:[%s6186_s6 + $0x18] sm:$0xff]   ;;  %4829 = vmatprep.subr.bf16.mxu1 %v5143_v17 }
 0x300   :  { %v1355_v50 = vpop.f32.mrf.mxu0  ;;  %v1431_v51 = vpop.f32.mrf.mxu1 }
 0x301   :  { %v1445_v26 = vadd.f32 %v1431_v51, %v1366_v21  ;;  %v1367_v28 = vadd.f32 %v1355_v50, %v1293_v25  ;;  %v5052_v21 = vld [vmem:[%s6187_s7 + $0x20] sm:$0xff]  }
 0x302   :  { %v4734_v52 = vpop.f32.mrf.mxu1  ;;  %4830 = vmatpush3.bf16.msra.mxu1 %v5052_v21  ;;  %v5088_v21 = vld [vmem:[%s6189_s9 + $0x6c] ss:$16 sps:$4 sm:$0xff]  }
 0x303   :  { %v4741_v53 = vpop.f32.mrf.mxu0  ;;  %4835 = vmatprep.subr.bf16.mxu1 %v5143_v17 }
 0x304   :  { %v1434_v56 = vpop.f32.mrf.mxu1  ;;  %v1521_v27 = vadd.f32 %v4741_v53, %v1447_v23  ;;  %v5053_v23 = vld [vmem:[%s6187_s7 + $0x48] sm:$0xff]  }
 0x305   :  { %v1505_v54 = vpop.f32.mrf.mxu0  ;;  %v1446_v32 = vadd.f32 %v1434_v56, %v1367_v28 }
 0x306   :  { %v1519_v22 = vadd.f32 %v1505_v54, %v1445_v26 }
 0x307   :  { %v4742_v55 = vpop.f32.mrf.mxu0 }
 0x309   :  { %v1508_v59 = vpop.f32.mrf.mxu0 }
 0x30a   :  { %v1520_v37 = vadd.f32 %v1508_v59, %v1446_v32 }
 0x30e   :  { %v4749_v57 = vpop.f32.mrf.mxu1 }
 0x30f   :  { %v1600_v29 = vadd.f32 %v4749_v57, %v1521_v27  ;;  %v4173_v57 = vld [vmem:[%s6188_s5] ss:$0 sm:$0xff] }
 0x310   :  { %v1584_v36 = vpop.f32.mrf.mxu1 }
 0x311   :  { %v1598_v30 = vadd.f32 %v1584_v36, %v1519_v22 }
 0x312   :  { %v4750_v60 = vpop.f32.mrf.mxu1  ;;  %v4757_v61 = vpop.f32.mrf.mxu0 }
 0x313   :  { %v1674_v33 = vadd.f32 %v4757_v61, %v1600_v29  ;;  %v5054_v29 = vld [vmem:[%s6187_s7 + $0x18] sm:$0xff]  }
 0x314   :  { %v1587_v63 = vpop.f32.mrf.mxu1  ;;  %v1658_v58 = vpop.f32.mrf.mxu0 }
 0x315   :  { %v1672_v34 = vadd.f32 %v1658_v58, %v1598_v30  ;;  %v1599_v41 = vadd.f32 %v1587_v63, %v1520_v37  ;;  %v5058_v37 = vld [vmem:[%s6187_s7 + $0x98] sm:$0xff]  }
 0x316   :  { %v4758_v1 = vpop.f32.mrf.mxu0  ;;  %v4765_v2 = vpop.f32.mrf.mxu1 }
 0x317   :  { %v1753_v38 = vadd.f32 %v4765_v2, %v1674_v33  ;;  %v5055_v33 = vld [vmem:[%s6187_s7 + $0x10] sm:$0xff]  }
 0x318   :  { %v1661_v5 = vpop.f32.mrf.mxu0  ;;  %v1737_v6 = vpop.f32.mrf.mxu1 }
 0x319   :  { %v1751_v42 = vadd.f32 %v1737_v6, %v1672_v34  ;;  %v1673_v46 = vadd.f32 %v1661_v5, %v1599_v41 }
 0x31a   :  { %v4766_v10 = vpop.f32.mrf.mxu1 }
 0x31b   :  { %v4773_v14 = vpop.f32.mrf.mxu0 }
 0x31c   :  { %v1740_v31 = vpop.f32.mrf.mxu1  ;;  %v1827_v43 = vadd.f32 %v4773_v14, %v1753_v38  ;;  %v5050_v14 = vld [vmem:[%s6187_s7 + $0x50] sm:$0xff]   ;;  %v5057_v38 = vld [vmem:[%s6187_s7 + $0x8] sm:$0xff]  }
 0x31d   :  { %v1811_v20 = vpop.f32.mrf.mxu0  ;;  %v1752_v52 = vadd.f32 %v1740_v31, %v1673_v46  ;;  %v5061_v46 = vld [vmem:[%s6187_s7 + $0x78] sm:$0xff]  }
 0x31e   :  { %v1825_v47 = vadd.f32 %v1811_v20, %v1751_v42  ;;  %v5046_v20 = vld [vmem:[%s6186_s6 + $0x20] ss:$0 sps:$4 sm:$0xff]  }
 0x31f   :  { %v4774_v24 = vpop.f32.mrf.mxu0  ;;  %v5059_v42 = vld [vmem:[%s6187_s7] sm:$0xff]  }
 0x320   :  { %v5056_v24 = vld [vmem:[%s6187_s7 + $0x40] sm:$0xff]  }
 0x321   :  { %v1814_v39 = vpop.f32.mrf.mxu0 }
 0x322   :  { %v1826_v59 = vadd.f32 %v1814_v39, %v1752_v52 }
 0x326   :  { %v4781_v35 = vpop.f32.mrf.mxu1 }
 0x327   :  { %v1906_v49 = vadd.f32 %v4781_v35, %v1827_v43 }
 0x328   :  { %v1890_v40 = vpop.f32.mrf.mxu1 }
 0x329   :  { %v1904_v53 = vadd.f32 %v1890_v40, %v1825_v47  ;;  %v5060_v40 = vld [vmem:[%s6187_s7 + $0x90] sm:$0xff]  }
 0x32a   :  { %v4782_v44 = vpop.f32.mrf.mxu1  ;;  %v4789_v45 = vpop.f32.mrf.mxu0 }
 0x32b   :  { %v1980_v54 = vadd.f32 %v4789_v45, %v1906_v49  ;;  %v5062_v44 = vld [vmem:[%s6187_s7 + $0x88] sm:$0xff]   ;;  %v5064_v49 = vld [vmem:[%s6187_s7 + $0x80] sm:$0xff]  }
 0x32c   :  { %v1893_v50 = vpop.f32.mrf.mxu1  ;;  %v1964_v51 = vpop.f32.mrf.mxu0 }
 0x32d   :  { %v1978_v36 = vadd.f32 %v1964_v51, %v1904_v53  ;;  %v1905_v63 = vadd.f32 %v1893_v50, %v1826_v59  ;;  %v5063_v51 = vld [vmem:[%s6187_s7 + $0x70] sm:$0xff]  }
 0x32e   :  { %v4790_v55 = vpop.f32.mrf.mxu0  ;;  %v4797_v56 = vpop.f32.mrf.mxu1  ;;  %v5068_v59 = vld [vmem:[%s6187_s7 + $0xd0] sm:$0xff]  }
 0x32f   :  { %v2059_v60 = vadd.f32 %v4797_v56, %v1980_v54  ;;  %v5066_v54 = vld [vmem:[%s6187_s7 + $0xd8] sm:$0xff]   ;;  %v5065_v56 = vld [vmem:[%s6187_s7 + $0x68] sm:$0xff]  }
 0x330   :  { %v1967_v61 = vpop.f32.mrf.mxu0  ;;  %v2043_v62 = vpop.f32.mrf.mxu1 }
 0x331   :  { %v2069_v58 = vadd.f32 %v4173_v57, %v2059_v60  ;;  %v2057_v0 = vadd.f32 %v2043_v62, %v1978_v36  ;;  %v1979_v2 = vadd.f32 %v1967_v61, %v1905_v63  ;;  %v5067_v60 = vld [vmem:[%s6187_s7 + $0x60] sm:$0xff]   ;;  %v5070_v62 = vld [vmem:[%s6187_s7 + $0xc8] sm:$0xff]  }
 0x332   :  { %v4798_v48 = vpop.f32.mrf.mxu1 }
 0x333   :  { %v2072_v1 = vmax.f32 %v2069_v58, 0.0  ;;  %v2067_v5 = vadd.f32 %v4173_v57, %v2057_v0  ;;  %v5069_v58 = vld [vmem:[%s6187_s7 + $0xb8] sm:$0xff]  }
 0x334   :  { %v2046_v3 = vpop.f32.mrf.mxu1 }
 0x335   :  { %v2074_v4 = vpack.c.bf16 %v2072_v1, %v2072_v1  ;;  %v2058_v6 = vadd.f32 %v2046_v3, %v1979_v2  ;;  %v2070_v9 = vmax.f32 %v2067_v5, 0.0  ;;  %v5072_v1 = vld [vmem:[%s6187_s7 + $0xc0] sm:$0xff]   ;;  %v5071_v2 = vld [vmem:[%s6187_s7 + $0xb0] sm:$0xff]   ;;  %v5073_v5 = vld [vmem:[%s6187_s7 + $0xa8] sm:$0xff]  }
 0x337   :  { %v2068_v7 = vadd.f32 %v4173_v57, %v2058_v6  ;;  %v2125_v8 = vsel %vm852_vm1, %v2074_v4, 0  ;;  %v5075_v4 = vld [vmem:[%s6187_s7 + $0x118] sm:$0xff]   ;;  %v5077_v6 = vld [vmem:[%s6187_s7 + $0x110] sm:$0xff]   ;;  %vm3901_vm1 = vcmask 1045509  }
 0x338   :  { %4800 = vmatpush3.bf16.msra.mxu0 %v2125_v8  ;;  %v5079_v8 = vld [vmem:[%s6187_s7 + $0x108] sm:$0xff]  }
 0x339   :  { %v2071_v10 = vmax.f32 %v2068_v7, 0.0  ;;  %4801 = vmatprep.subr.bf16.mxu0 %v5143_v17  ;;  %v5074_v7 = vld [vmem:[%s6187_s7 + $0xa0] sm:$0xff]  }
 0x33b   :  { %v2073_v11 = vpack.c.bf16 %v2071_v10, %v2070_v9  ;;  %v5076_v9 = vld [vmem:[%s6187_s7 + $0xf8] sm:$0xff]  }
 0x33d   :  { %4802 = vmatpush3.bf16.msra.mxu0 %v2073_v11  ;;  %v5081_v11 = vld [vmem:[%s6187_s7 + $0x100] sm:$0xff]  }
 0x33e   :  { %4847 = vmatprep.subr.bf16.mxu0 %v5143_v17 }
 0x340   :  { %4804 = vmatmul.mubr.msk.bf16.vlgmr.msra.gmra.mxu0 %vm2107_vm3, %v5042_v12  ;;  %v5078_v12 = vld [vmem:[%s6187_s7 + $0xf0] sm:$0xff]  }
 0x341   :  { %4807 = vmatprep.mubr.msk.bf16.mxu0 %vm5144_vm2, %v5143_v17  ;;  %4848 = vmatpush3.bf16.msra.mxu0 %v5047_v13 }
 0x342   :  { %4849 = vmatprep.subr.bf16.mxu0 %v5143_v17 }
 0x345   :  { %4850 = vmatpush3.bf16.msra.mxu0 %v5050_v14  ;;  %v5080_v14 = vld [vmem:[%s6187_s7 + $0xe8] sm:$0xff]  }
 0x346   :  { %4851 = vmatprep.subr.bf16.mxu0 %v5143_v17 }
 0x348   :  { %4808 = vmatmul.mubr.msk.bf16.gmra.mxu0 %vm2107_vm3, %v5043_v15  ;;  %v5082_v15 = vld [vmem:[%s6187_s7 + $0xe0] sm:$0xff]  }
 0x349   :  { %4811 = vmatprep.mubr.msk.bf16.mxu0 %vm5144_vm2, %v5143_v17  ;;  %4852 = vmatpush3.bf16.msra.mxu0 %v5053_v23  ;;  %v5089_v23 = vld [vmem:[%s6189_s9 + $0x40] ss:$16 sps:$4 sm:$0xff]  }
 0x34a   :  { %4853 = vmatprep.subr.bf16.mxu0 %v5143_v17 }
 0x34d   :  { %4854 = vmatpush3.bf16.msra.mxu0 %v5056_v24  ;;  %v5091_v24 = vld [vmem:[%s6189_s9 + $0x44] ss:$16 sps:$4 sm:$0xff]  }
 0x34e   :  { %4871 = vmatprep.subr.bf16.mxu0 %v5143_v17 }
 0x350   :  { %4812 = vmatmul.mubr.msk.bf16.gmra.mxu0 %vm2107_vm3, %v5044_v16 }
 0x351   :  { %4815 = vmatprep.mubr.msk.bf16.mxu0 %vm5144_vm2, %v5143_v17 }
 0x358   :  { %4816 = vmatmul.mubr.msk.bf16.gmra.mxu0 %vm2107_vm3, %v5045_v18  ;;  %v5083_v18 = vld [vmem:[%s6189_s9 + $0x60] ss:$16 sps:$4 sm:$0xff]  }
 0x359   :  { %4819 = vmatprep.mubr.msk.bf16.mxu0 %vm5144_vm2, %v5143_v17 }
 0x360   :  { %4820 = vmatmul.mubr.msk.bf16.gmra.mxu0 %vm2107_vm3, %v5046_v20  ;;  %v5085_v20 = vld [vmem:[%s6189_s9 + $0x64] ss:$16 sps:$4 sm:$0xff]   ;;  %vm3905_vm3 = vcmask 1047559  }
 0x361   :  { %4855 = vmatprep.mubr.msk.bf16.mxu0 %vm5144_vm2, %v5143_v17 }
 0x400   :  { %v2161_v25 = vpop.f32.mrf.mxu0 }
 0x402   :  { %v4805_v26 = vpop.f32.mrf.mxu0 }
 0x403   :  { %v5094_v26 = vld [vmem:[%s6189_s9 + $0x4c] ss:$16 sps:$4 sm:$0xff]  }
 0x404   :  { %v2164_v27 = vpop.f32.mrf.mxu0 }
 0x405   :  { %v2199_v28 = vpack.c.bf16 %v2164_v27, %v2161_v25  ;;  %v5092_v25 = vld [vmem:[%s6189_s9 + $0x48] ss:$16 sps:$4 sm:$0xff]   ;;  %v5097_v27 = vld [vmem:[%s6189_s9 + $0x24] ss:$16 sps:$4 sm:$0xff]  }
 0x406   :  { %v4806_v22 = vpop.f32.mrf.mxu0 }
 0x407   :  { %v2222_v31 = vrot.slane %v2199_v28, 4  ;;  %v5095_v22 = vld [vmem:[%s6189_s9 + $0x20] ss:$16 sps:$4 sm:$0xff]  }
 0x408   :  { %v2169_v32 = vpop.f32.mrf.mxu0 }
 0x409   :  { %4832 = vmatmul.mubr.msk.bf16.vlgmr.msra.gmra.mxu1 %vm2247_vm4, %v2222_v31  ;;  %v5103_v31 = vld [vmem:[%s6189_s9 + $0x4] ss:$16 sps:$4 sm:$0xff]  }
 0x40a   :  { %4836 = vmatpush3.bf16.msra.mxu1 %v5054_v29  ;;  %v4809_v30 = vpop.f32.mrf.mxu0  ;;  %4843 = vmatprep.mubr.msk.bf16.mxu1 %vm5144_vm2, %v5143_v17  ;;  %v5098_v29 = vld [vmem:[%s6189_s9 + $0x28] ss:$16 sps:$4 sm:$0xff]  }
 0x40b   :  { %4837 = vmatprep.subr.bf16.mxu1 %v5143_v17  ;;  %v5101_v30 = vld [vmem:[%s6189_s9] ss:$16 sps:$4 sm:$0xff]  }
 0x40c   :  { %v2172_v35 = vpop.f32.mrf.mxu0 }
 0x40d   :  { %v5642_v34 = vpack.c.bf16 %v2172_v35, %v2169_v32  ;;  %v5106_v32 = vld [vmem:[%s6189_s9 + $0xc] ss:$16 sps:$4 sm:$0xff]   ;;  %v5145_v35 = vmov 0  }
 0x40e   :  { %4838 = vmatpush3.bf16.msra.mxu1 %v5055_v33  ;;  %v4810_v39 = vpop.f32.mrf.mxu0  ;;  %v5104_v33 = vld [vmem:[%s6189_s9 + $0x8] ss:$16 sps:$4 sm:$0xff]  }
 0x40f   :  { %4839 = vmatprep.subr.bf16.mxu1 %v5143_v17  ;;  %4856 = vmatmul.mubr.msk.bf16.vlgmr.msra.gmra.mxu0 %vm2247_vm4, %v5642_v34  ;;  %v2445_v48 = vrot.slane %v5642_v34, 4  ;;  %v5108_v34 = vld [vmem:[%s6190_s11 + $0xf8] sm:$0xff]  }
 0x410   :  { %4872 = vmatpush3.bf16.msra.mxu0 %v5058_v37  ;;  %v2177_v41 = vpop.f32.mrf.mxu0  ;;  %4879 = vmatprep.mubr.msk.bf16.mxu0 %vm5144_vm2, %v5143_v17  ;;  %v5107_v37 = vld [vmem:[%s6190_s11 + $0x78] sm:$0xff]  }
 0x411   :  { %4873 = vmatprep.subr.bf16.mxu0 %v5143_v17 }
 0x412   :  { %4840 = vmatpush3.bf16.msra.mxu1 %v5057_v38  ;;  %v4813_v43 = vpop.f32.mrf.mxu0 }
 0x413   :  { %4841 = vmatprep.subr.bf16.mxu1 %v5143_v17 }
 0x414   :  { %4874 = vmatpush3.bf16.msra.mxu0 %v5060_v40  ;;  %v2180_v45 = vpop.f32.mrf.mxu0 }
 0x415   :  { %4875 = vmatprep.subr.bf16.mxu0 %v5143_v17  ;;  %v2201_v53 = vpack.c.bf16 %v2180_v45, %v2177_v41 }
 0x416   :  { %4842 = vmatpush3.bf16.msra.mxu1 %v5059_v42  ;;  %v4814_v47 = vpop.f32.mrf.mxu0 }
 0x417   :  { %4859 = vmatprep.subr.bf16.mxu1 %v5143_v17  ;;  %v2601_v10 = vrot.slane %v2201_v53, 4 }
 0x418   :  { %4876 = vmatpush3.bf16.msra.mxu0 %v5062_v44  ;;  %v2185_v50 = vpop.f32.mrf.mxu0 }
 0x419   :  { %4844 = vmatmul.mubr.msk.bf16.vlgmr.msra.gmra.mxu1 %vm2247_vm4, %v2199_v28  ;;  %4877 = vmatprep.subr.bf16.mxu0 %v5143_v17  ;;  %v5100_v28 = vld [vmem:[%s6189_s9 + $0x2c] ss:$16 sps:$4 sm:$0xff]  }
 0x41a   :  { %4860 = vmatpush3.bf16.msra.mxu1 %v5061_v46  ;;  %4867 = vmatprep.mubr.msk.bf16.mxu1 %vm5144_vm2, %v5143_v17  ;;  %v4817_v52 = vpop.f32.mrf.mxu0 }
 0x41b   :  { %4861 = vmatprep.subr.bf16.mxu1 %v5143_v17 }
 0x41c   :  { %4878 = vmatpush3.bf16.msra.mxu0 %v5064_v49  ;;  %v2188_v55 = vpop.f32.mrf.mxu0 }
 0x41d   :  { %4895 = vmatprep.subr.bf16.mxu0 %v5143_v17  ;;  %v2202_v3 = vpack.c.bf16 %v2188_v55, %v2185_v50 }
 0x41e   :  { %4862 = vmatpush3.bf16.msra.mxu1 %v5063_v51  ;;  %v4818_v57 = vpop.f32.mrf.mxu0 }
 0x41f   :  { %4863 = vmatprep.subr.bf16.mxu1 %v5143_v17  ;;  %4880 = vmatmul.mubr.msk.bf16.vlgmr.msra.gmra.mxu0 %vm2247_vm4, %v2201_v53  ;;  %v2757_v16 = vrot.slane %v2202_v3, 4 }
 0x420   :  { %4896 = vmatpush3.bf16.msra.mxu0 %v5066_v54  ;;  %4903 = vmatprep.mubr.msk.bf16.mxu0 %vm5144_vm2, %v5143_v17  ;;  %v2193_v36 = vpop.f32.mrf.mxu0 }
 0x421   :  { %4897 = vmatprep.subr.bf16.mxu0 %v5143_v17  ;;  %v2203_v13 = vpack.c.bf16 %v2193_v36, %v2193_v36 }
 0x422   :  { %4864 = vmatpush3.bf16.msra.mxu1 %v5065_v56  ;;  %v4821_v61 = vpop.f32.mrf.mxu0 }
 0x423   :  { %4865 = vmatprep.subr.bf16.mxu1 %v5143_v17 }
 0x424   :  { %4898 = vmatpush3.bf16.msra.mxu0 %v5068_v59  ;;  %v2196_v63 = vpop.f32.mrf.mxu0 }
 0x425   :  { %4899 = vmatprep.subr.bf16.mxu0 %v5143_v17 }
 0x426   :  { %4866 = vmatpush3.bf16.msra.mxu1 %v5067_v60  ;;  %v4822_v0 = vpop.f32.mrf.mxu0 }
 0x427   :  { %4883 = vmatprep.subr.bf16.mxu1 %v5143_v17 }
 0x428   :  { %4900 = vmatpush3.bf16.msra.mxu0 %v5070_v62 }
 0x429   :  { %4868 = vmatmul.mubr.msk.bf16.vlgmr.msra.gmra.mxu1 %vm2247_vm4, %v2445_v48  ;;  %4901 = vmatprep.subr.bf16.mxu0 %v5143_v17 }
 0x42a   :  { %4884 = vmatpush3.bf16.msra.mxu1 %v5069_v58  ;;  %4891 = vmatprep.mubr.msk.bf16.mxu1 %vm5144_vm2, %v5143_v17 }
 0x42b   :  { %4885 = vmatprep.subr.bf16.mxu1 %v5143_v17 }
 0x42c   :  { %4902 = vmatpush3.bf16.msra.mxu0 %v5072_v1 }
 0x42d   :  { %4919 = vmatprep.subr.bf16.mxu0 %v5143_v17 }
 0x42e   :  { %4886 = vmatpush3.bf16.msra.mxu1 %v5071_v2 }
 0x42f   :  { %4887 = vmatprep.subr.bf16.mxu1 %v5143_v17  ;;  %4904 = vmatmul.mubr.msk.bf16.vlgmr.msra.gmra.mxu0 %vm2247_vm4, %v2202_v3 }
 0x430   :  { %4920 = vmatpush3.bf16.msra.mxu0 %v5075_v4  ;;  %4927 = vmatprep.mubr.msk.bf16.mxu0 %vm5144_vm2, %v5143_v17 }
 0x431   :  { %4921 = vmatprep.subr.bf16.mxu0 %v5143_v17 }
 0x432   :  { %4888 = vmatpush3.bf16.msra.mxu1 %v5073_v5 }
 0x433   :  { %4889 = vmatprep.subr.bf16.mxu1 %v5143_v17 }
 0x434   :  { %4922 = vmatpush3.bf16.msra.mxu0 %v5077_v6 }
 0x435   :  { %4923 = vmatprep.subr.bf16.mxu0 %v5143_v17 }
 0x436   :  { %4890 = vmatpush3.bf16.msra.mxu1 %v5074_v7 }
 0x437   :  { %4907 = vmatprep.subr.bf16.mxu1 %v5143_v17 }
 0x438   :  { %4924 = vmatpush3.bf16.msra.mxu0 %v5079_v8 }
 0x439   :  { %4892 = vmatmul.mubr.msk.bf16.vlgmr.msra.gmra.mxu1 %vm2247_vm4, %v2601_v10  ;;  %4925 = vmatprep.subr.bf16.mxu0 %v5143_v17 }
 0x43a   :  { %4908 = vmatpush3.bf16.msra.mxu1 %v5076_v9  ;;  %4915 = vmatprep.mubr.msk.bf16.mxu1 %vm5144_vm2, %v5143_v17 }
 0x43b   :  { %4909 = vmatprep.subr.bf16.mxu1 %v5143_v17 }
 0x43c   :  { %4926 = vmatpush3.bf16.msra.mxu0 %v5081_v11 }
 0x43d   :  { %3083 = vmatprep.subr.bf16.mxu0 %v5088_v21  ;;  %v5109_v21 = vld [vmem:[%s6190_s11 + $0x38] sm:$0xff]  }
 0x43e   :  { %4910 = vmatpush3.bf16.msra.mxu1 %v5078_v12 }
 0x43f   :  { %4911 = vmatprep.subr.bf16.mxu1 %v5143_v17  ;;  %4928 = vmatmul.mubr.msk.bf16.vlgmr.msra.gmra.mxu0 %vm2247_vm4, %v2203_v13  ;;  %v4293_v13 = vld [vmem:[%s6191_s8] ss:$0 sm:$0xff] }
 0x440   :  { %3084 = vmatpush1.bf16.msra.mxu0 %v5086_v19  ;;  %3107 = vmatprep.mubr.bf16.mxu0 %v5145_v35 }
 0x441   :  { %3085 = vmatprep.subr.bf16.mxu0 %v5094_v26  ;;  %v5112_v26 = vld [vmem:[%s6190_s11 + $0xf0] sm:$0xff]  }
 0x442   :  { %4912 = vmatpush3.bf16.msra.mxu1 %v5080_v14 }
 0x443   :  { %4913 = vmatprep.subr.bf16.mxu1 %v5143_v17 }
 0x444   :  { %3086 = vmatpush1.bf16.msra.mxu0 %v5092_v25  ;;  %v5111_v25 = vld [vmem:[%s6190_s11 + $0x70] sm:$0xff]  }
 0x445   :  { %3087 = vmatprep.subr.bf16.mxu0 %v5100_v28  ;;  %v5114_v28 = vld [vmem:[%s6190_s11 + $0xb0] sm:$0xff]  }
 0x446   :  { %4914 = vmatpush3.bf16.msra.mxu1 %v5082_v15 }
 0x447   :  { %3042 = vmatprep.subr.bf16.mxu1 %v5085_v20 }
 0x448   :  { %3088 = vmatpush1.bf16.msra.mxu0 %v5098_v29  ;;  %v5116_v29 = vld [vmem:[%s6190_s11 + $0xe8] sm:$0xff]  }
 0x449   :  { %4916 = vmatmul.mubr.msk.bf16.vlgmr.msra.gmra.mxu1 %vm2247_vm4, %v2757_v16  ;;  %3089 = vmatprep.subr.bf16.mxu0 %v5106_v32  ;;  %v5118_v32 = vld [vmem:[%s6190_s11 + $0xa8] sm:$0xff]  }
 0x44a   :  { %3043 = vmatpush1.bf16.msra.mxu1 %v5083_v18  ;;  %3066 = vmatprep.mubr.bf16.mxu1 %v5145_v35  ;;  %v5121_v35 = vld [vmem:[%s6190_s11 + $0x20] sm:$0xff]  }
 0x44b   :  { %3044 = vmatprep.subr.bf16.mxu1 %v5091_v24 }
 0x44c   :  { %3090 = vmatpush1.bf16.msra.mxu0 %v5104_v33  ;;  %v5120_v33 = vld [vmem:[%s6190_s11 + $0xe0] sm:$0xff]  }
 0x44d   :  { %4580 = vmatprep.subr.bf16.mxu0 %v5108_v34  ;;  %v5123_v34 = vld [vmem:[%s6190_s11 + $0x58] sm:$0xff]  }
 0x44e   :  { %3045 = vmatpush1.bf16.msra.mxu1 %v5089_v23  ;;  %v5110_v23 = vld [vmem:[%s6190_s11 + $0xb8] sm:$0xff]  }
 0x44f   :  { %3046 = vmatprep.subr.bf16.mxu1 %v5097_v27  ;;  %v5113_v27 = vld [vmem:[%s6190_s11 + $0x30] sm:$0xff]  }
 0x452   :  { %3047 = vmatpush1.bf16.msra.mxu1 %v5095_v22  ;;  %v5115_v22 = vld [vmem:[%s6190_s11 + $0x68] sm:$0xff]  }
 0x453   :  { %3048 = vmatprep.subr.bf16.mxu1 %v5103_v31  ;;  %v5117_v31 = vld [vmem:[%s6190_s11 + $0x28] sm:$0xff]  }
 0x456   :  { %3049 = vmatpush1.bf16.msra.mxu1 %v5101_v30  ;;  %v5119_v30 = vld [vmem:[%s6190_s11 + $0x60] sm:$0xff]  }
 0x457   :  { %4558 = vmatprep.subr.bf16.mxu1 %v5107_v37  ;;  %v5122_v37 = vld [vmem:[%s6190_s11 + $0xa0] sm:$0xff]  }
 0x4c9   :  { %v2285_v38 = vpop.f32.mrf.mxu1 }
 0x4cb   :  { %v4833_v39 = vpop.f32.mrf.mxu1 }
 0x4cc   :  { %v5125_v39 = vld [vmem:[%s6190_s11 + $0x18] sm:$0xff]  }
 0x4cd   :  { %v2288_v40 = vpop.f32.mrf.mxu1 }
 0x4ce   :  { %v5126_v40 = vld [vmem:[%s6190_s11 + $0x98] sm:$0xff]  }
 0x4cf   :  { %v4834_v41 = vpop.f32.mrf.mxu1  ;;  %v2428_v42 = vpop.f32.mrf.mxu0 }
 0x4d0   :  { %v5127_v41 = vld [vmem:[%s6190_s11 + $0x50] sm:$0xff]  }
 0x4d1   :  { %v4857_v43 = vpop.f32.mrf.mxu0 }
 0x4d2   :  { %v5129_v43 = vld [vmem:[%s6190_s11 + $0x10] sm:$0xff]  }
 0x4d3   :  { %v2431_v44 = vpop.f32.mrf.mxu0 }
 0x4d4   :  { %v5130_v44 = vld [vmem:[%s6190_s11 + $0x90] sm:$0xff]  }
 0x4d5   :  { %v4858_v45 = vpop.f32.mrf.mxu0 }
 0x4d6   :  { %v5131_v45 = vld [vmem:[%s6190_s11 + $0x48] sm:$0xff]  }
 0x4d9   :  { %v2352_v46 = vpop.f32.mrf.mxu1 }
 0x4da   :  { %v2353_v63 = vadd.f32 %v2352_v46, %v2285_v38  ;;  %v5124_v38 = vld [vmem:[%s6190_s11 + $0xd8] sm:$0xff]   ;;  %v5132_v46 = vld [vmem:[%s6190_s11 + $0xc8] sm:$0xff]  }
 0x4db   :  { %v4845_v47 = vpop.f32.mrf.mxu1 }
 0x4dc   :  { %v2434_v48 = vadd.f32 %v2428_v42, %v2353_v63  ;;  %v5128_v42 = vld [vmem:[%s6190_s11 + $0xd0] sm:$0xff]   ;;  %v5133_v47 = vld [vmem:[%s6190_s11 + $0x8] sm:$0xff]  }
 0x4dd   :  { %v2355_v49 = vpop.f32.mrf.mxu1 }
 0x4de   :  { %v5134_v49 = vld [vmem:[%s6190_s11 + $0x88] sm:$0xff]  }
 0x4df   :  { %v4846_v50 = vpop.f32.mrf.mxu1  ;;  %v2584_v51 = vpop.f32.mrf.mxu0 }
 0x4e0   :  { %v5135_v50 = vld [vmem:[%s6190_s11 + $0x40] sm:$0xff]  }
 0x4e1   :  { %v4881_v52 = vpop.f32.mrf.mxu0 }
 0x4e2   :  { %v5137_v52 = vld [vmem:[%s6190_s11] sm:$0xff]  }
 0x4e3   :  { %v2587_v53 = vpop.f32.mrf.mxu0 }
 0x4e4   :  { %v5138_v53 = vld [vmem:[%s6190_s11 + $0x80] sm:$0xff]  }
 0x4e5   :  { %v4882_v54 = vpop.f32.mrf.mxu0 }
 0x4e6   :  { %v2931_v54 = vlaneseq }
 0x4e9   :  { %v2507_v55 = vpop.f32.mrf.mxu1 }
 0x4ea   :  { %v2513_v2 = vadd.f32 %v2507_v55, %v2434_v48  ;;  %v5917_v55 = vshrl.u32 %v2931_v54, 7 }
 0x4eb   :  { %v4869_v56 = vpop.f32.mrf.mxu1 }
 0x4ec   :  { %v2590_v6 = vadd.f32 %v2584_v51, %v2513_v2  ;;  %v5136_v51 = vld [vmem:[%s6190_s11 + $0xc0] sm:$0xff]   ;;  %v5920_v56 = vsub.s32 0, %v5917_v55 }
 0x4ed   :  { %v2510_v57 = vpop.f32.mrf.mxu1 }
 0x4ee   :  { %v2941_v57 = vsub.s32 2, %v5917_v55 }
 0x4ef   :  { %v4870_v59 = vpop.f32.mrf.mxu1  ;;  %v2740_v36 = vpop.f32.mrf.mxu0 }
 0x4f0   :  { %v2929_v59 = vld [vmem:[%s6192_s10] sm:$0xf] }
 0x4f1   :  { %v4905_v60 = vpop.f32.mrf.mxu0 }
 0x4f2   :  { %v2945_v60 = vsub.s32 3, %v5917_v55 }
 0x4f3   :  { %v2743_v61 = vpop.f32.mrf.mxu0 }
 0x4f4   :  { %v2934_v61 = vrot.slane %v2929_v59, %v5920_v56 }
 0x4f5   :  { %v4906_v62 = vpop.f32.mrf.mxu0 }
 0x4f6   :  { %v2942_v62 = vrot.slane %v2929_v59, %v2941_v57 }
 0x4f9   :  { %v2663_v58 = vpop.f32.mrf.mxu1 }
 0x4fa   :  { %v2669_v8 = vadd.f32 %v2663_v58, %v2590_v6  ;;  %v2946_v58 = vrot.slane %v2929_v59, %v2945_v60 }
 0x4fb   :  { %v4893_v0 = vpop.f32.mrf.mxu1 }
 0x4fc   :  { %v2746_v10 = vadd.f32 %v2740_v36, %v2669_v8  ;;  %v2937_v36 = vsub.s32 1, %v5917_v55 }
 0x4fd   :  { %v2666_v1 = vpop.f32.mrf.mxu1 }
 0x4fe   :  { %v2938_v63 = vrot.slane %v2929_v59, %v2937_v36 }
 0x4ff   :  { %v4894_v3 = vpop.f32.mrf.mxu1  ;;  %v2896_v4 = vpop.f32.mrf.mxu0 }
 0x501   :  { %v4929_v5 = vpop.f32.mrf.mxu0 }
 0x503   :  { %v2899_v7 = vpop.f32.mrf.mxu0 }
 0x505   :  { %v4930_v9 = vpop.f32.mrf.mxu0 }
 0x509   :  { %v2819_v11 = vpop.f32.mrf.mxu1 }
 0x50a   :  { %v2825_v12 = vadd.f32 %v2819_v11, %v2746_v10 }
 0x50b   :  { %v4917_v14 = vpop.f32.mrf.mxu1 }
 0x50c   :  { %v2902_v15 = vadd.f32 %v2896_v4, %v2825_v12 }
 0x50d   :  { %v2822_v16 = vpop.f32.mrf.mxu1 }
 0x50e   :  { %v2910_v18 = vadd.f32 %v4293_v13, %v2902_v15 }
 0x50f   :  { %v4918_v20 = vpop.f32.mrf.mxu1 }
 0x510   :  { %v2911_v19 = vmax.f32 %v2910_v18, 0.0 }
 0x512   :  { %v2912_v24 = vpack.c.bf16 %v2911_v19, %v2911_v19  ;;  %v5934_v19 = vld [vmem:[%s6193_s13 + $0x18] sm:$0xff] }
 0x513   :  { %vm3474_vm8 = vcmp.gt.f32.partialorder %v5934_v19, 0.5 }
 0x514   :  { %4310 = vmatmul.mubr.msk.bf16.vlgmr.msra.gmra.mxu1 %vm2247_vm4, %v2912_v24  ;;  %4311 = vmatmul.mubr.msk.bf16.vlgmr.msra.gmra.mxu0 %vm2247_vm4, %v2912_v24  ;;  %v5954_v24 = vld [vmem:[%s6193_s13] sm:$0xff]  ;;  %vm3986_vm4 = vcmask 254976  }
 0x515   :  { %4559 = vmatpush3.bf16.msra.mxu1 %v5109_v21  ;;  %4581 = vmatpush3.bf16.msra.mxu0 %v5110_v23  ;;  %v5940_v21 = vld [vmem:[%s6193_s13 + $0x10] sm:$0xff]  ;;  %v5947_v23 = vld [vmem:[%s6193_s13 + $0x8] sm:$0xff]  ;;  %vm3471_vm5 = vcmp.gt.f32.partialorder %v5954_v24, 0.5 }
 0x516   :  { %4560 = vmatprep.subr.bf16.mxu1 %v5111_v25  ;;  %4582 = vmatprep.subr.bf16.mxu0 %v5112_v26  ;;  %v5146_v25 = vmov 1966171168   ;;  %vm3472_vm6 = vcmp.gt.f32.partialorder %v5947_v23, 0.5  ;;  %vm3473_vm7 = vcmp.gt.f32.partialorder %v5940_v21, 0.5 }
 0x517   :  { %v3478_v26 = vunpack.c.l.s4 %v5146_v25 }
 0x519   :  { %4561 = vmatpush3.bf16.msra.mxu1 %v5113_v27  ;;  %4583 = vmatpush3.bf16.msra.mxu0 %v5114_v28 }
 0x51a   :  { %4562 = vmatprep.subr.bf16.mxu1 %v5115_v22  ;;  %4584 = vmatprep.subr.bf16.mxu0 %v5116_v29  ;;  %v3479_v22 = vunpack.c.0.s8 %v3478_v26  ;;  %v4312_v29 = vld [vmem:[%s6194_s12] ss:$0 sm:$0xff] }
 0x51d   :  { %4563 = vmatpush3.bf16.msra.mxu1 %v5117_v31  ;;  %4585 = vmatpush3.bf16.msra.mxu0 %v5118_v32 }
 0x51e   :  { %4564 = vmatprep.subr.bf16.mxu1 %v5119_v30  ;;  %4586 = vmatprep.subr.bf16.mxu0 %v5120_v33 }
 0x521   :  { %4565 = vmatpush3.bf16.msra.mxu1 %v5121_v35  ;;  %4587 = vmatpush3.bf16.msra.mxu0 %v5122_v37 }
 0x522   :  { %4566 = vmatprep.subr.bf16.mxu1 %v5123_v34  ;;  %4588 = vmatprep.subr.bf16.mxu0 %v5124_v38 }
 0x525   :  { %4567 = vmatpush3.bf16.msra.mxu1 %v5125_v39  ;;  %4589 = vmatpush3.bf16.msra.mxu0 %v5126_v40 }
 0x526   :  { %4568 = vmatprep.subr.bf16.mxu1 %v5127_v41  ;;  %4590 = vmatprep.subr.bf16.mxu0 %v5128_v42 }
 0x529   :  { %4569 = vmatpush3.bf16.msra.mxu1 %v5129_v43  ;;  %4591 = vmatpush3.bf16.msra.mxu0 %v5130_v44 }
 0x52a   :  { %4570 = vmatprep.subr.bf16.mxu1 %v5131_v45  ;;  %4592 = vmatprep.subr.bf16.mxu0 %v5132_v46 }
 0x52d   :  { %4571 = vmatpush3.bf16.msra.mxu1 %v5133_v47  ;;  %4593 = vmatpush3.bf16.msra.mxu0 %v5134_v49 }
 0x52e   :  { %4572 = vmatprep.subr.bf16.mxu1 %v5135_v50  ;;  %4594 = vmatprep.subr.bf16.mxu0 %v5136_v51 }
 0x531   :  { %4573 = vmatpush3.bf16.msra.mxu1 %v5137_v52  ;;  %4595 = vmatpush3.bf16.msra.mxu0 %v5138_v53 }
 0x532   :  { %4931 = vmatprep.subr.mxu1 %v5143_v17 }
 0x5d4   :  { %v3068_v0 = vpop.f32.mrf.mxu1  ;;  %v3109_v48 = vpop.f32.mrf.mxu0 }
 0x5d5   :  { %v3069_v1 = vadd.f32 %v3068_v0, %v2934_v61  ;;  %v3110_v2 = vadd.f32 %v3109_v48, %v2942_v62 }
 0x5d6   :  { %v3070_v3 = vpop.f32.mrf.mxu1  ;;  %v3111_v4 = vpop.f32.mrf.mxu0 }
 0x5d7   :  { %v3071_v5 = vadd.f32 %v3070_v3, %v2938_v63  ;;  %v3112_v6 = vadd.f32 %v3111_v4, %v2946_v58  ;;  %v3116_v7 = vmax.f32 %v3069_v1, 0.0  ;;  %v3118_v8 = vmax.f32 %v3110_v2, 0.0 }
 0x5d8   :  { %v3072_v9 = vpop.f32.mrf.mxu1  ;;  %v3113_v10 = vpop.f32.mrf.mxu0 }
 0x5d9   :  { %v3117_v11 = vmax.f32 %v3071_v5, 0.0  ;;  %v3119_v12 = vmax.f32 %v3112_v6, 0.0  ;;  %v3120_v18 = vpack.c.bf16 %v3116_v7, %v3116_v7  ;;  %v3122_v20 = vpack.c.bf16 %v3118_v8, %v3118_v8 }
 0x5da   :  { %v3073_v13 = vpop.f32.mrf.mxu1  ;;  %v3114_v14 = vpop.f32.mrf.mxu0 }
 0x5db   :  { %v3121_v15 = vpack.c.bf16 %v3117_v11, %v3117_v11  ;;  %v3123_v16 = vpack.c.bf16 %v3119_v12, %v3119_v12 }
 0x5dd   :  { %3419 = vmatprep.mubr.bf16.mxu1 %v3121_v15  ;;  %3459 = vmatprep.mubr.bf16.mxu0 %v3123_v16 }
 0x5de   :  { %3420 = vmatmul.mubr.bf16.vlgmr.msra.gmra.mxu1 %v3120_v18  ;;  %3460 = vmatmul.mubr.bf16.vlgmr.msra.gmra.mxu0 %v3122_v20 }
 0x5df   :  { %4939 = vmatprep.mubr.msk.f32.mxu1 %vm5144_vm2, %v5143_v17  ;;  %4932 = vmatpush3.msra.mxu1 %v5934_v19  ;;  %vm3903_vm2 = vcmask 1046534  }
 0x5e0   :  { %4933 = vmatprep.subr.mxu1 %v5143_v17 }
 0x5e1   :  { %4934 = vmatpush3.msra.mxu1 %v5940_v21 }
 0x5e2   :  { %4935 = vmatprep.subr.mxu1 %v5143_v17 }
 0x5e3   :  { %4936 = vmatpush3.msra.mxu1 %v5947_v23 }
 0x5e4   :  { %4937 = vmatprep.subr.mxu1 %v5143_v17  ;;  %v5962_v17 = vsub.s32 %v3479_v22, %v5917_v55 }
 0x5e5   :  { %4938 = vmatpush3.msra.mxu1 %v5954_v24 }
 0x69e   :  { %v4574_v27 = vpop.f32.mrf.mxu1  ;;  %v4596_v28 = vpop.f32.mrf.mxu0 }
 0x6a0   :  { %v4575_v31 = vpop.f32.mrf.mxu1  ;;  %v4597_v32 = vpop.f32.mrf.mxu0 }
 0x6a1   :  { %v4576_v30 = vadd.f32 %v4575_v31, %v4574_v27  ;;  %v4598_v34 = vadd.f32 %v4597_v32, %v4596_v28 }
 0x6a2   :  { %v4577_v33 = vpop.f32.mrf.mxu1  ;;  %v4599_v35 = vpop.f32.mrf.mxu0 }
 0x6a3   :  { %v3422_v37 = vadd.f32 %v4576_v30, %v4312_v29 }
 0x6a4   :  { %v4578_v38 = vpop.f32.mrf.mxu1  ;;  %v4600_v39 = vpop.f32.mrf.mxu0 }
 0x6a5   :  { %v5964_v40 = vadd.f32 %v4598_v34, %v3422_v37 }
 0x6a7   :  { %v3483_v41 = vrot.slane %v5964_v40, %v5962_v17  ;;  %v3476_v36 = vcombine.high %v5964_v40, %v5964_v40 }
 0x6a9   :  { %v3491_v42 = vcombine.high %v3483_v41, %v3483_v41  ;;  %v3499_v43 = vrot.slane %v3483_v41, %v5962_v17  ;;  %v3490_v0 = vrot.slane %v3476_v36, %v5962_v17 }
 0x6ab   :  { %v3536_v44 = vrot.slane %v3499_v43, %v5920_v56  ;;  %v3513_v45 = vrot.slane %v3491_v42, %v5962_v17  ;;  %v3521_v53 = vcombine.high %v3499_v43, %v3499_v43  ;;  %v3506_v4 = vrot.slane %v3490_v0, %v5962_v17 }
 0x6ac   :  { %v3492_v25 = vcombine.high %v3490_v0, %v3490_v0 }
 0x6ad   :  { %v3573_v46 = vsel %vm3471_vm5, %v3536_v44, -1e+30  ;;  %v3540_v49 = vrot.slane %v3513_v45, %v5920_v56  ;;  %v3574_v50 = vsel %vm3472_vm6, %v3536_v44, -1e+30  ;;  %v3575_v60 = vsel %vm3473_vm7, %v3536_v44, -1e+30 }
 0x6ae   :  { %v3605_v47 = vsel %vm868_vm0, %v3573_v46, -inf  ;;  %v3608_v57 = vsel %vm868_vm0, %v3574_v50, -inf  ;;  %v3611_v62 = vsel %vm868_vm0, %v3575_v60, -inf  ;;  %v3544_v58 = vrot.slane %v3521_v53, %v5920_v56 }
 0x6af   :  { %3606 = vmax.xlane.f32.xlu0 %v3605_v47  ;;  %v3577_v51 = vsel %vm3471_vm5, %v3540_v49, -1e+30  ;;  %v3578_v59 = vsel %vm3472_vm6, %v3540_v49, -1e+30  ;;  %v3579_v63 = vsel %vm3473_vm7, %v3540_v49, -1e+30  ;;  %v3552_v10 = vrot.slane %v3506_v4, %v5920_v56 }
 0x6b0   :  { %v3617_v52 = vsel %vm868_vm0, %v3577_v51, -inf  ;;  %v3620_v61 = vsel %vm868_vm0, %v3578_v59, -inf  ;;  %v3576_v48 = vsel %vm3474_vm8, %v3536_v44, -1e+30  ;;  %v3623_v1 = vsel %vm868_vm0, %v3579_v63, -inf }
 0x6b1   :  { %3618 = vmax.xlane.f32.xlu1 %v3617_v52  ;;  %v3614_v2 = vsel %vm868_vm0, %v3576_v48, -inf  ;;  %v3582_v3 = vsel %vm3472_vm6, %v3544_v58, -1e+30  ;;  %v3581_v5 = vsel %vm3471_vm5, %v3544_v58, -1e+30  ;;  %v3523_v15 = vcombine.high %v3513_v45, %v3513_v45 }
 0x6b2   :  { %v3632_v6 = vsel %vm868_vm0, %v3582_v3, -inf  ;;  %v3629_v7 = vsel %vm868_vm0, %v3581_v5, -inf  ;;  %v3580_v8 = vsel %vm3474_vm8, %v3540_v49, -1e+30  ;;  %v3583_v9 = vsel %vm3473_vm7, %v3544_v58, -1e+30 }
 0x6b3   :  { %3609 = vmax.xlane.f32.xlu0 %v3608_v57  ;;  %v3626_v11 = vsel %vm868_vm0, %v3580_v8, -inf  ;;  %v3635_v12 = vsel %vm868_vm0, %v3583_v9, -inf  ;;  %v3584_v13 = vsel %vm3474_vm8, %v3544_v58, -1e+30  ;;  %v3590_v14 = vsel %vm3472_vm6, %v3552_v10, -1e+30 }
 0x6b4   :  { %v3638_v16 = vsel %vm868_vm0, %v3584_v13, -inf  ;;  %v3656_v18 = vsel %vm868_vm0, %v3590_v14, -inf  ;;  %v3589_v20 = vsel %vm3471_vm5, %v3552_v10, -1e+30  ;;  %v3591_v26 = vsel %vm3473_vm7, %v3552_v10, -1e+30 }
 0x6b5   :  { %3621 = vmax.xlane.f32.xlu1 %v3620_v61  ;;  %v3548_v27 = vrot.slane %v3523_v15, %v5920_v56  ;;  %v3653_v28 = vsel %vm868_vm0, %v3589_v20, -inf  ;;  %v3659_v22 = vsel %vm868_vm0, %v3591_v26, -inf  ;;  %v3592_v29 = vsel %vm3474_vm8, %v3552_v10, -1e+30 }
 0x6b6   :  { %v3520_v32 = vrot.slane %v3492_v25, %v5962_v17  ;;  %v3662_v30 = vsel %vm868_vm0, %v3592_v29, -inf  ;;  %v3522_v41 = vcombine.high %v3506_v4, %v3506_v4 }
 0x6b7   :  { %3612 = vmax.xlane.f32.xlu0 %v3611_v62  ;;  %v3586_v31 = vsel %vm3472_vm6, %v3548_v27, -1e+30  ;;  %v3585_v35 = vsel %vm3471_vm5, %v3548_v27, -1e+30  ;;  %v3587_v37 = vsel %vm3473_vm7, %v3548_v27, -1e+30 }
 0x6b8   :  { %v3644_v33 = vsel %vm868_vm0, %v3586_v31, -inf  ;;  %v3556_v34 = vrot.slane %v3520_v32, %v5920_v56  ;;  %v3641_v38 = vsel %vm868_vm0, %v3585_v35, -inf  ;;  %v3647_v39 = vsel %vm868_vm0, %v3587_v37, -inf }
 0x6b9   :  { %3624 = vmax.xlane.f32.xlu1 %v3623_v1  ;;  %v3588_v17 = vsel %vm3474_vm8, %v3548_v27, -1e+30  ;;  %v3560_v46 = vrot.slane %v3522_v41, %v5920_v56  ;;  %v3524_v53 = vcombine.high %v3520_v32, %v3520_v32 }
 0x6ba   :  { %v3594_v42 = vsel %vm3472_vm6, %v3556_v34, -1e+30  ;;  %v3650_v43 = vsel %vm868_vm0, %v3588_v17, -inf  ;;  %v3593_v45 = vsel %vm3471_vm5, %v3556_v34, -1e+30 }
 0x6bb   :  { %3615 = vmax.xlane.f32.xlu0 %v3614_v2  ;;  %v3668_v44 = vsel %vm868_vm0, %v3594_v42, -inf  ;;  %v3595_v47 = vsel %vm3473_vm7, %v3556_v34, -1e+30  ;;  %v3665_v49 = vsel %vm868_vm0, %v3593_v45, -inf  ;;  %v3597_v51 = vsel %vm3471_vm5, %v3560_v46, -1e+30 }
 0x6bc   :  { %v3671_v50 = vsel %vm868_vm0, %v3595_v47, -inf  ;;  %v3598_v52 = vsel %vm3472_vm6, %v3560_v46, -1e+30  ;;  %v3677_v57 = vsel %vm868_vm0, %v3597_v51, -inf  ;;  %v3596_v36 = vsel %vm3474_vm8, %v3556_v34, -1e+30 }
 0x6bd   :  { %3633 = vmax.xlane.f32.xlu1 %v3632_v6  ;;  %v3680_v59 = vsel %vm868_vm0, %v3598_v52, -inf  ;;  %v3599_v60 = vsel %vm3473_vm7, %v3560_v46, -1e+30  ;;  %v3564_v61 = vrot.slane %v3524_v53, %v5920_v56  ;;  %v3674_v62 = vsel %vm868_vm0, %v3596_v36, -inf }
 0x6be   :  { %v3683_v63 = vsel %vm868_vm0, %v3599_v60, -inf  ;;  %v3600_v58 = vsel %vm3474_vm8, %v3560_v46, -1e+30 }
 0x6bf   :  { %3630 = vmax.xlane.f32.xlu0 %v3629_v7  ;;  %v3602_v0 = vsel %vm3472_vm6, %v3564_v61, -1e+30  ;;  %v3686_v48 = vsel %vm868_vm0, %v3600_v58, -inf  ;;  %v3601_v56 = vsel %vm3471_vm5, %v3564_v61, -1e+30 }
 0x6c0   :  { %v3692_v1 = vsel %vm868_vm0, %v3602_v0, -inf  ;;  %v3603_v2 = vsel %vm3473_vm7, %v3564_v61, -1e+30  ;;  %v3689_v3 = vsel %vm868_vm0, %v3601_v56, -inf  ;;  %v3604_v23 = vsel %vm3474_vm8, %v3564_v61, -1e+30 }
 0x6c1   :  { %3627 = vmax.xlane.f32.xlu1 %v3626_v11  ;;  %v3695_v4 = vsel %vm868_vm0, %v3603_v2, -inf  ;;  %v3698_v5 = vsel %vm868_vm0, %v3604_v23, -inf }
 0x6c3   :  { %3636 = vmax.xlane.f32.xlu0 %v3635_v12 }
 0x6c5   :  { %3639 = vmax.xlane.f32.xlu1 %v3638_v16 }
 0x6c7   :  { %3657 = vmax.xlane.f32.xlu0 %v3656_v18 }
 0x6c9   :  { %3654 = vmax.xlane.f32.xlu1 %v3653_v28  ;;  %v3734_v28 = vand.u32 127, %v2931_v54 }
 0x6cb   :  { %3660 = vmax.xlane.f32.xlu0 %v3659_v22  ;;  %v3739_v29 = vadd.s32 4294967288, %v3734_v28  ;;  %v3746_v32 = vadd.s32 4294967280, %v3734_v28  ;;  %v6102_v34 = vsub.s32 %v3734_v28, %v5917_v55 }
 0x6cd   :  { %3663 = vmax.xlane.f32.xlu1 %v3662_v30  ;;  %v3753_v30 = vadd.s32 4294967272, %v3734_v28  ;;  %v6097_v35 = vsub.s32 %v3739_v29, %v5917_v55 }
 0x6cf   :  { %3645 = vmax.xlane.f32.xlu0 %v3644_v33  ;;  %v6108_v54 = vsub.s32 %v3753_v30, %v5917_v55 }
 0x6d1   :  { %3642 = vmax.xlane.f32.xlu1 %v3641_v38  ;;  %v6105_v38 = vsub.s32 %v3746_v32, %v5917_v55 }
 0x6d3   :  { %3648 = vmax.xlane.f32.xlu0 %v3647_v39 }
 0x6d5   :  { %3651 = vmax.xlane.f32.xlu1 %v3650_v43 }
 0x6d7   :  { %3669 = vmax.xlane.f32.xlu0 %v3668_v44 }
 0x6d9   :  { %3666 = vmax.xlane.f32.xlu1 %v3665_v49 }
 0x6db   :  { %3672 = vmax.xlane.f32.xlu0 %v3671_v50 }
 0x6dd   :  { %3678 = vmax.xlane.f32.xlu1 %v3677_v57 }
 0x6df   :  { %3681 = vmax.xlane.f32.xlu0 %v3680_v59 }
 0x6e1   :  { %3675 = vmax.xlane.f32.xlu1 %v3674_v62 }
 0x6e3   :  { %3684 = vmax.xlane.f32.xlu0 %v3683_v63 }
 0x6e5   :  { %3687 = vmax.xlane.f32.xlu1 %v3686_v48 }
 0x6e7   :  { %3693 = vmax.xlane.f32.xlu0 %v3692_v1 }
 0x6e9   :  { %3690 = vmax.xlane.f32.xlu1 %v3689_v3 }
 0x6eb   :  { %3696 = vmax.xlane.f32.xlu0 %v3695_v4 }
 0x6ed   :  { %3699 = vmax.xlane.f32.xlu1 %v3698_v5 }
 0x738   :  { %v3607_v6 = vpop.xlane.xlu0 %3606 }
 0x739   :  { %v3738_v44 = vrot.slane %v3607_v6, %v6102_v34 }
 0x73a   :  { %v3619_v7 = vpop.xlane.xlu1 %3618 }
 0x73b   :  { %v3763_v51 = vrot.slane %v3619_v7, %v6102_v34 }
 0x73c   :  { %v3610_v24 = vpop.xlane.xlu0 %3609 }
 0x73d   :  { %v3743_v17 = vrot.slane %v3610_v24, %v6097_v35 }
 0x73e   :  { %v3622_v8 = vpop.xlane.xlu1 %3621 }
 0x73f   :  { %v3767_v45 = vrot.slane %v3622_v8, %v6097_v35  ;;  %v3745_v59 = vsel %vm3744_vm9, %v3743_v17, %v3738_v44 }
 0x740   :  { %v3613_v9 = vpop.xlane.xlu0 %3612 }
 0x741   :  { %v3750_v55 = vrot.slane %v3613_v9, %v6105_v38  ;;  %v3768_v63 = vsel %vm3744_vm9, %v3767_v45, %v3763_v51 }
 0x742   :  { %v3625_v10 = vpop.xlane.xlu1 %3624 }
 0x743   :  { %v3772_v47 = vrot.slane %v3625_v10, %v6105_v38  ;;  %v3752_v1 = vsel %vm3751_vm10, %v3750_v55, %v3745_v59 }
 0x744   :  { %v6083_v21 = vpop.xlane.xlu0 %3615 }
 0x745   :  { %v3757_v58 = vrot.slane %v6083_v21, %v6108_v54  ;;  %v3773_v56 = vsel %vm3751_vm10, %v3772_v47, %v3768_v63 }
 0x746   :  { %v3634_v11 = vpop.xlane.xlu1 %3633 }
 0x747   :  { %v3786_v49 = vrot.slane %v3634_v11, %v6097_v35  ;;  %v3759_v11 = vsel %vm3758_vm11, %v3757_v58, %v3752_v1 }
 0x748   :  { %v3631_v12 = vpop.xlane.xlu0 %3630 }
 0x749   :  { %v3782_v41 = vrot.slane %v3631_v12, %v6102_v34 }
 0x74a   :  { %v3628_v13 = vpop.xlane.xlu1 %3627 }
 0x74b   :  { %v3777_v52 = vrot.slane %v3628_v13, %v6108_v54  ;;  %v3787_v36 = vsel %vm3744_vm9, %v3786_v49, %v3782_v41 }
 0x74c   :  { %v3637_v14 = vpop.xlane.xlu0 %3636 }
 0x74d   :  { %v3791_v46 = vrot.slane %v3637_v14, %v6105_v38  ;;  %v3778_v4 = vsel %vm3758_vm11, %v3777_v52, %v3773_v56 }
 0x74e   :  { %v3640_v15 = vpop.xlane.xlu1 %3639 }
 0x74f   :  { %v3796_v60 = vrot.slane %v3640_v15, %v6108_v54  ;;  %v3792_v0 = vsel %vm3751_vm10, %v3791_v46, %v3787_v36  ;;  %v3894_v15 = vsel %vm3893_vm12, %v3778_v4, %v3759_v11 }
 0x750   :  { %v6085_v16 = vpop.xlane.xlu0 %3657 }
 0x751   :  { %v3824_v23 = vrot.slane %v6085_v16, %v6097_v35  ;;  %v3797_v24 = vsel %vm3758_vm11, %v3796_v60, %v3792_v0 }
 0x752   :  { %v6087_v19 = vpop.xlane.xlu1 %3654 }
 0x753   :  { %v3820_v48 = vrot.slane %v6087_v19, %v6102_v34 }
 0x754   :  { %v6089_v18 = vpop.xlane.xlu0 %3660 }
 0x755   :  { %v3829_v8 = vrot.slane %v6089_v18, %v6105_v38  ;;  %v3825_v12 = vsel %vm3744_vm9, %v3824_v23, %v3820_v48 }
 0x756   :  { %v6091_v20 = vpop.xlane.xlu1 %3663 }
 0x757   :  { %v3830_v29 = vsel %vm3751_vm10, %v3829_v8, %v3825_v12 }
 0x758   :  { %v3646_v25 = vpop.xlane.xlu0 %3645 }
 0x759   :  { %v3805_v50 = vrot.slane %v3646_v25, %v6097_v35  ;;  %v3896_v25 = vsel %vm3895_vm13, %v3797_v24, %v3894_v15 }
 0x75a   :  { %v3643_v26 = vpop.xlane.xlu1 %3642 }
 0x75b   :  { %v3801_v42 = vrot.slane %v3643_v26, %v6102_v34  ;;  %v3834_v26 = vrot.slane %v6091_v20, %v6108_v54 }
 0x75c   :  { %v3649_v27 = vpop.xlane.xlu0 %3648 }
 0x75d   :  { %v3810_v53 = vrot.slane %v3649_v27, %v6105_v38  ;;  %v3806_v61 = vsel %vm3744_vm9, %v3805_v50, %v3801_v42  ;;  %v3835_v42 = vsel %vm3758_vm11, %v3834_v26, %v3830_v29 }
 0x75e   :  { %v6094_v22 = vpop.xlane.xlu1 %3651 }
 0x75f   :  { %v3815_v2 = vrot.slane %v6094_v22, %v6108_v54  ;;  %v3811_v5 = vsel %vm3751_vm10, %v3810_v53, %v3806_v61 }
 0x760   :  { %v3670_v31 = vpop.xlane.xlu0 %3669 }
 0x761   :  { %v3843_v9 = vrot.slane %v3670_v31, %v6097_v35  ;;  %v3816_v16 = vsel %vm3758_vm11, %v3815_v2, %v3811_v5 }
 0x762   :  { %v3667_v33 = vpop.xlane.xlu1 %3666 }
 0x763   :  { %v3839_v3 = vrot.slane %v3667_v33, %v6102_v34 }
 0x764   :  { %v6099_v37 = vpop.xlane.xlu0 %3672 }
 0x765   :  { %v3848_v13 = vrot.slane %v6099_v37, %v6105_v38  ;;  %v3844_v19 = vsel %vm3744_vm9, %v3843_v9, %v3839_v3  ;;  %v3898_v37 = vsel %vm3897_vm14, %v3816_v16, %v3896_v25 }
 0x766   :  { %v3679_v39 = vpop.xlane.xlu1 %3678  ;;  %v3900_v44 = vsel %vm3899_vm15, %v3835_v42, %v3898_v37 }
 0x767   :  { %v3858_v14 = vrot.slane %v3679_v39, %v6102_v34  ;;  %v3849_v39 = vsel %vm3751_vm10, %v3848_v13, %v3844_v19 }
 0x768   :  { %v3682_v43 = vpop.xlane.xlu0 %3681 }
 0x769   :  { %v3862_v6 = vrot.slane %v3682_v43, %v6097_v35 }
 0x76a   :  { %v3676_v57 = vpop.xlane.xlu1 %3675 }
 0x76b   :  { %v3853_v18 = vrot.slane %v3676_v57, %v6108_v54  ;;  %v3863_v27 = vsel %vm3744_vm9, %v3862_v6, %v3858_v14 }
 0x76c   :  { %v3685_v62 = vpop.xlane.xlu0 %3684 }
 0x76d   :  { %v3867_v10 = vrot.slane %v3685_v62, %v6105_v38  ;;  %v3854_v17 = vsel %vm3758_vm11, %v3853_v18, %v3849_v39 }
 0x76e   :  { %v3688_v7 = vpop.xlane.xlu1 %3687  ;;  %v3902_v46 = vsel %vm3901_vm1, %v3854_v17, %v3900_v44 }
 0x76f   :  { %v3872_v28 = vrot.slane %v3688_v7, %v6108_v54  ;;  %v3868_v31 = vsel %vm3751_vm10, %v3867_v10, %v3863_v27 }
 0x770   :  { %v3694_v21 = vpop.xlane.xlu0 %3693 }
 0x771   :  { %v3881_v32 = vrot.slane %v3694_v21, %v6097_v35  ;;  %v3873_v35 = vsel %vm3758_vm11, %v3872_v28, %v3868_v31 }
 0x772   :  { %v3691_v22 = vpop.xlane.xlu1 %3690  ;;  %v3904_v55 = vsel %vm3903_vm2, %v3873_v35, %v3902_v46 }
 0x773   :  { %v3877_v30 = vrot.slane %v3691_v22, %v6102_v34 }
 0x774   :  { %v3697_v33 = vpop.xlane.xlu0 %3696 }
 0x775   :  { %v3886_v20 = vrot.slane %v3697_v33, %v6105_v38  ;;  %v3882_v41 = vsel %vm3744_vm9, %v3881_v32, %v3877_v30 }
 0x776   :  { %v3700_v43 = vpop.xlane.xlu1 %3699 }
 0x777   :  { %v3887_v34 = vsel %vm3751_vm10, %v3886_v20, %v3882_v41  ;;  %v3891_v45 = vrot.slane %v3700_v43, %v6108_v54 }
 0x779   :  { %v3892_v38 = vsel %vm3758_vm11, %v3891_v45, %v3887_v34 }
 0x77a   :  { %v3906_v47 = vsel %vm3905_vm3, %v3892_v38, %v3904_v55 }
 0x77b   :  { %v3908_v49 = vsub.f32 %v5964_v40, %v3906_v47 }
 0x77d   :  { %v3909_v50 = vmul.f32 1.442695, %v3908_v49 }
 0x77f   :  { %5139 = vpow2.f32 %v3909_v50 }
 0x78c   :  { %v5140_v51 = vpop.eup %5139 }
 0x78d   :  { %4940 = vmatmul.mubr.msk.f32.vlgmr.msra.gmra.mxu1 %vm868_vm0, %v5140_v51 }
 0x84d   :  { %v3980_v52 = vpop.f32.mrf.mxu1 }
 0x84e   :  { %5141 = vrcp.f32 %v3980_v52 }
 0x84f   :  { %v4941_v53 = vpop.f32.mrf.mxu1 }
 0x85b   :  { %v5142_v57 = vpop.eup %5141 }
 0x85c   :  { %v3985_v59 = vmul.f32 %v5142_v57, %v5140_v51 }
 0x85e   :  { %3987 = vst.msk [vmem:[%s6195_s14] sm:$0x3] %vm3986_vm4, %v3985_v59 }

</bundles_post_ra>
